<compile_context>
chip_gen: v7x
topology: tpu7x:2x2x1
jax: 0.10.0
libtpu: 0.0.40
codegen_flags: <defaults>
</compile_context>

<pallas_src>
import math
import jax
import jax.numpy as jnp
from jax import lax
from jax.experimental import pallas as pl
from jax.experimental.pallas import tpu as pltpu

# ---- static model config (small shapes consistent with the module) ----
BATCH = 2
SEQ_LEN = 16
VOCAB = 50
VOCAB_PAD = ((VOCAB + 7) // 8) * 8          # pad vocab for aligned MXU contraction
EMB_DIM = 32
SA_HEADS = 4
HIDDEN_SA = 32                               # total across heads
HEAD_DIM = HIDDEN_SA // SA_HEADS             # 8
HIDDEN_OUT = EMB_DIM                         # residual ZF + X requires hidden_units_out == embed_dim
NUM_LABELS = 2
BL = BATCH * SEQ_LEN
HH = SA_HEADS * HEAD_DIM
QKV_DIM = 3 * HH


def transformer_kernel(ids_ref, emb_ref, wqkv_ref, bqkv_ref, wz_ref, bz_ref,
                       wout_ref, bout_ref, o_ref):
    # ---- embedding lookup in-kernel: one-hot(ids) @ table on the MXU ----
    ids = ids_ref[...]                                            # (BL, 1) int32
    vocab_iota = lax.broadcasted_iota(jnp.int32, (BL, VOCAB_PAD), 1)
    onehot = (vocab_iota == ids).astype(jnp.float32)              # (BL, Vp)
    x = jnp.dot(onehot, emb_ref[...],
                preferred_element_type=jnp.float32)               # (BL, E)

    # ---- fused Q/K/V projection for all heads: one matmul instead of 12 ----
    qkv = jnp.dot(x, wqkv_ref[...],
                  preferred_element_type=jnp.float32) + bqkv_ref[...]
    qkv = jnp.maximum(qkv, 0.0)                                   # relu on Q, K, V

    wz = wz_ref[...]                                              # (HH, HIDDEN_OUT)
    bz = bz_ref[...]                                              # (1, HIDDEN_OUT)
    wout = wout_ref[...]                                          # (NUM_LABELS*L, E)
    inv_sqrt_e = 1.0 / math.sqrt(EMB_DIM)

    row_i = lax.broadcasted_iota(jnp.int32, (BATCH, NUM_LABELS), 0)
    col_i = lax.broadcasted_iota(jnp.int32, (BATCH, NUM_LABELS), 1)
    logits = jnp.zeros((BATCH, NUM_LABELS), jnp.float32)

    for b in range(BATCH):                                        # static unroll
        r0 = b * SEQ_LEN
        xb = x[r0:r0 + SEQ_LEN, :]                                # (L, E)
        zf = jnp.zeros((SEQ_LEN, HIDDEN_OUT), jnp.float32) + bz   # WZ bias added once
        for hi in range(SA_HEADS):                                # static unroll
            c = hi * HEAD_DIM
            q = qkv[r0:r0 + SEQ_LEN, c:c + HEAD_DIM]              # (L, h)
            k = qkv[r0:r0 + SEQ_LEN, HH + c:HH + c + HEAD_DIM]
            v = qkv[r0:r0 + SEQ_LEN, 2 * HH + c:2 * HH + c + HEAD_DIM]
            # scores (L_q, L_k) = q @ k^T / sqrt(E)   (dropout on QK: eval identity)
            s = lax.dot_general(q, k, (((1,), (1,)), ((), ())),
                                preferred_element_type=jnp.float32) * inv_sqrt_e
            # torch: softmax(dim=1) over the query axis (rows here) ...
            a = jnp.exp(s - jnp.max(s, axis=0, keepdims=True))
            a = a / jnp.sum(a, axis=0, keepdims=True)
            # ... then softmax(dim=2) over the key axis (columns here)
            a = jnp.exp(a - jnp.max(a, axis=1, keepdims=True))
            a = a / jnp.sum(a, axis=1, keepdims=True)
            z = jnp.dot(a, v, preferred_element_type=jnp.float32) # (L, h)
            # running accumulation of the WZ projection (no head concat / relayout)
            zf = zf + jnp.dot(z, wz[c:c + HEAD_DIM, :],
                              preferred_element_type=jnp.float32)
        # residual (layer_norm=False path); dropout on ZF / Xf: eval identity
        xres = zf + xb                                            # (L, E)
        # Flatten + OutputLayer on the VPU: per-label Frobenius inner product
        for n in range(NUM_LABELS):
            wn = wout[n * SEQ_LEN:(n + 1) * SEQ_LEN, :]           # (L, E)
            val = jnp.sum(xres * wn, keepdims=True)               # (1, 1)
            logits = jnp.where((row_i == b) & (col_i == n), val, logits)

    logits = logits + bout_ref[...]                               # (1, NUM_LABELS) broadcast
    o_ref[...] = jax.nn.sigmoid(logits)                           # (B, NUM_LABELS)


def init_params(key):
    """Parameters in PyTorch layouts (Linear weight = (out, in))."""
    ks = jax.random.split(key, 29)
    i = 0
    emb = 0.1 * jax.random.normal(ks[i], (VOCAB, EMB_DIM), jnp.float32); i += 1
    bound = 1.0 / math.sqrt(EMB_DIM)
    wq, bq, wk, bk, wv, bv = [], [], [], [], [], []
    for _ in range(SA_HEADS):
        wq.append(jax.random.uniform(ks[i], (HEAD_DIM, EMB_DIM), jnp.float32, -bound, bound)); i += 1
        bq.append(jax.random.uniform(ks[i], (HEAD_DIM,), jnp.float32, -bound, bound)); i += 1
        wk.append(jax.random.uniform(ks[i], (HEAD_DIM, EMB_DIM), jnp.float32, -bound, bound)); i += 1
        bk.append(jax.random.uniform(ks[i], (HEAD_DIM,), jnp.float32, -bound, bound)); i += 1
        wv.append(jax.random.uniform(ks[i], (HEAD_DIM, EMB_DIM), jnp.float32, -bound, bound)); i += 1
        bv.append(jax.random.uniform(ks[i], (HEAD_DIM,), jnp.float32, -bound, bound)); i += 1
    bound_z = 1.0 / math.sqrt(HIDDEN_SA)
    wz = jax.random.uniform(ks[i], (HIDDEN_OUT, HIDDEN_SA), jnp.float32, -bound_z, bound_z); i += 1
    bz = jax.random.uniform(ks[i], (HIDDEN_OUT,), jnp.float32, -bound_z, bound_z); i += 1
    bound_o = 1.0 / math.sqrt(SEQ_LEN * HIDDEN_OUT)
    wout = jax.random.uniform(ks[i], (NUM_LABELS, SEQ_LEN * HIDDEN_OUT), jnp.float32,
                              -bound_o, bound_o); i += 1
    bout = jax.random.uniform(ks[i], (NUM_LABELS,), jnp.float32, -bound_o, bound_o); i += 1
    return dict(embedding=emb, wq=wq, bq=bq, wk=wk, bk=bk, wv=wv, bv=bv,
                wz=wz, bz=bz, wout=wout, bout=bout)


def pack_params(params):
    """One-time repack into kernel layouts (hoisted out of the per-call path)."""
    emb_p = jnp.zeros((VOCAB_PAD, EMB_DIM), jnp.float32).at[:VOCAB].set(params['embedding'])
    wq_all = jnp.concatenate([w.T for w in params['wq']], axis=1)     # (E, HH)
    wk_all = jnp.concatenate([w.T for w in params['wk']], axis=1)
    wv_all = jnp.concatenate([w.T for w in params['wv']], axis=1)
    wqkv = jnp.concatenate([wq_all, wk_all, wv_all], axis=1)          # (E, 3*HH)
    bqkv = jnp.concatenate(params['bq'] + params['bk'] + params['bv']).reshape(1, QKV_DIM)
    wz = params['wz'].T                                               # (HH, HIDDEN_OUT)
    bz = params['bz'].reshape(1, HIDDEN_OUT)
    wout = params['wout'].reshape(NUM_LABELS * SEQ_LEN, EMB_DIM)      # row n*L+l, col e
    bout = params['bout'].reshape(1, NUM_LABELS)
    return dict(emb=emb_p, wqkv=wqkv, bqkv=bqkv, wz=wz, bz=bz, wout=wout, bout=bout)


def classic_transformer_forward(seqs, packed):
    """seqs: (B, L) int32 token ids -> (B, num_labels) float32 sigmoid outputs."""
    ids = seqs.reshape(BL, 1).astype(jnp.int32)
    vmem = pl.BlockSpec(memory_space=pltpu.MemorySpace.VMEM)
    return pl.pallas_call(
        transformer_kernel,
        out_shape=jax.ShapeDtypeStruct((BATCH, NUM_LABELS), jnp.float32),
        in_specs=[vmem] * 8,
        out_specs=vmem,
    )(ids, packed['emb'], packed['wqkv'], packed['bqkv'],
      packed['wz'], packed['bz'], packed['wout'], packed['bout'])


def reference_forward(seqs, params):
    """Pure-JAX reference matching the PyTorch forward (eval mode)."""
    X = jnp.take(params['embedding'], seqs, axis=0)                   # (B, L, E)
    Zs = []
    for i in range(SA_HEADS):
        Q = jax.nn.relu(jnp.einsum('ble,he->blh', X, params['wq'][i]) + params['bq'][i])
        K = jax.nn.relu(jnp.einsum('ble,he->blh', X, params['wk'][i]) + params['bk'][i])
        V = jax.nn.relu(jnp.einsum('ble,he->blh', X, params['wv'][i]) + params['bv'][i])
        QK = jnp.einsum('bqh,bkh->bqk', Q, K)
        S = QK / math.sqrt(EMB_DIM)
        A = jax.nn.softmax(S, axis=1)        # torch dim=1 (query axis)
        A = jax.nn.softmax(A, axis=2)        # torch dim=2 (key axis)
        Zs.append(jnp.einsum('bqk,bkh->bqh', A, V))
    Zall = jnp.concatenate(Zs, axis=2)                                # (B, L, HH)
    ZF = jnp.einsum('blh,oh->blo', Zall, params['wz']) + params['bz']
    X_ = ZF + X                                                       # layer_norm=False
    Xf = X_.reshape(BATCH, SEQ_LEN * HIDDEN_OUT)
    y = Xf @ params['wout'].T + params['bout']
    return jax.nn.sigmoid(y)


if __name__ == "__main__":
    key = jax.random.PRNGKey(0)
    k_param, k_seq = jax.random.split(key)
    params = init_params(k_param)
    packed = pack_params(params)
    seqs = jax.random.randint(k_seq, (BATCH, SEQ_LEN), 0, VOCAB, dtype=jnp.int32)

    out = jax.block_until_ready(classic_transformer_forward(seqs, packed))
    ref = jax.block_until_ready(reference_forward(seqs, params))

    assert out.shape == (BATCH, NUM_LABELS)
    assert jnp.allclose(out, ref, atol=1e-4, rtol=1e-3), (out, ref)
    print("KERNEL_OK")
</pallas_src>

<mosaic_0001>
module attributes {stable_mosaic.version = 11 : i64} {
  func.func @transformer_kernel(%arg0: memref<32x1xi32, #tpu.memory_space<vmem>>, %arg1: memref<56x32xf32, #tpu.memory_space<vmem>>, %arg2: memref<32x96xf32, #tpu.memory_space<vmem>>, %arg3: memref<1x96xf32, #tpu.memory_space<vmem>>, %arg4: memref<32x32xf32, #tpu.memory_space<vmem>>, %arg5: memref<1x32xf32, #tpu.memory_space<vmem>>, %arg6: memref<32x32xf32, #tpu.memory_space<vmem>>, %arg7: memref<1x2xf32, #tpu.memory_space<vmem>>, %arg8: memref<2x2xf32, #tpu.memory_space<vmem>>) attributes {dimension_semantics = [], scalar_prefetch = 0 : i64, scratch_operands = 0 : i64, tpu.core_type = #tpu.core_type<tc>} {
    %c0 = arith.constant 0 : index
    %c0_0 = arith.constant 0 : index
    %0 = vector.load %arg0[%c0, %c0_0] : memref<32x1xi32, #tpu.memory_space<vmem>>, vector<32x1xi32>
    %1 = tpu.iota {dimensions = array<i32: 1>} : vector<32x56xi32>
    %2 = vector.broadcast %0 : vector<32x1xi32> to vector<32x56xi32>
    %3 = arith.cmpi eq, %1, %2 : vector<32x56xi32>
    %4 = arith.extui %3 : vector<32x56xi1> to vector<32x56xi32>
    %5 = arith.sitofp %4 : vector<32x56xi32> to vector<32x56xf32>
    %c0_1 = arith.constant 0 : index
    %c0_2 = arith.constant 0 : index
    %6 = vector.load %arg1[%c0_1, %c0_2] : memref<56x32xf32, #tpu.memory_space<vmem>>, vector<56x32xf32>
    %cst = arith.constant dense<0.000000e+00> : vector<32x32xf32>
    %7 = tpu.matmul %5, %6, %cst {dimension_numbers = #tpu.dot_dimension_numbers<[1], [0], [0], [1], [0, 0, 1, 1], [], []>} : vector<32x56xf32>, vector<56x32xf32>, vector<32x32xf32> -> vector<32x32xf32>
    %c0_3 = arith.constant 0 : index
    %c0_4 = arith.constant 0 : index
    %8 = vector.load %arg2[%c0_3, %c0_4] : memref<32x96xf32, #tpu.memory_space<vmem>>, vector<32x96xf32>
    %cst_5 = arith.constant dense<0.000000e+00> : vector<32x96xf32>
    %9 = tpu.matmul %7, %8, %cst_5 {dimension_numbers = #tpu.dot_dimension_numbers<[1], [0], [0], [1], [0, 0, 1, 1], [], []>} : vector<32x32xf32>, vector<32x96xf32>, vector<32x96xf32> -> vector<32x96xf32>
    %c0_6 = arith.constant 0 : index
    %c0_7 = arith.constant 0 : index
    %10 = vector.load %arg3[%c0_6, %c0_7] : memref<1x96xf32, #tpu.memory_space<vmem>>, vector<1x96xf32>
    %11 = vector.broadcast %10 : vector<1x96xf32> to vector<32x96xf32>
    %12 = arith.addf %9, %11 : vector<32x96xf32>
    %cst_8 = arith.constant 0.000000e+00 : f32
    %13 = vector.broadcast %cst_8 : f32 to vector<32x96xf32>
    %14 = arith.maximumf %12, %13 : vector<32x96xf32>
    %c0_9 = arith.constant 0 : index
    %c0_10 = arith.constant 0 : index
    %15 = vector.load %arg4[%c0_9, %c0_10] : memref<32x32xf32, #tpu.memory_space<vmem>>, vector<32x32xf32>
    %c0_11 = arith.constant 0 : index
    %c0_12 = arith.constant 0 : index
    %16 = vector.load %arg5[%c0_11, %c0_12] : memref<1x32xf32, #tpu.memory_space<vmem>>, vector<1x32xf32>
    %c0_13 = arith.constant 0 : index
    %c0_14 = arith.constant 0 : index
    %17 = vector.load %arg6[%c0_13, %c0_14] : memref<32x32xf32, #tpu.memory_space<vmem>>, vector<32x32xf32>
    %18 = tpu.iota {dimensions = array<i32: 0>} : vector<2x2xi32>
    %19 = tpu.iota {dimensions = array<i32: 1>} : vector<2x2xi32>
    %cst_15 = arith.constant 0.000000e+00 : f32
    %20 = vector.broadcast %cst_15 : f32 to vector<2x2xf32>
    %21 = vector.extract_strided_slice %7 {offsets = [0, 0], sizes = [16, 32], strides = [1, 1]} : vector<32x32xf32> to vector<16x32xf32>
    %cst_16 = arith.constant 0.000000e+00 : f32
    %22 = vector.broadcast %cst_16 : f32 to vector<16x32xf32>
    %23 = vector.broadcast %16 : vector<1x32xf32> to vector<16x32xf32>
    %24 = arith.addf %22, %23 : vector<16x32xf32>
    %25 = vector.extract_strided_slice %14 {offsets = [0, 0], sizes = [16, 8], strides = [1, 1]} : vector<32x96xf32> to vector<16x8xf32>
    %26 = vector.extract_strided_slice %14 {offsets = [0, 32], sizes = [16, 8], strides = [1, 1]} : vector<32x96xf32> to vector<16x8xf32>
    %27 = vector.extract_strided_slice %14 {offsets = [0, 64], sizes = [16, 8], strides = [1, 1]} : vector<32x96xf32> to vector<16x8xf32>
    %cst_17 = arith.constant dense<0.000000e+00> : vector<16x16xf32>
    %28 = tpu.matmul %25, %26, %cst_17 {dimension_numbers = #tpu.dot_dimension_numbers<[1], [1], [0], [0], [0, 0, 1, 0], [], []>} : vector<16x8xf32>, vector<16x8xf32>, vector<16x16xf32> -> vector<16x16xf32>
    %cst_18 = arith.constant 0.176776692 : f32
    %29 = vector.broadcast %cst_18 : f32 to vector<16x16xf32>
    %30 = arith.mulf %28, %29 : vector<16x16xf32>
    %cst_19 = arith.constant dense<0xFF800000> : vector<16xf32>
    %31 = vector.multi_reduction <maximumf>, %30, %cst_19 [0] : vector<16x16xf32> to vector<16xf32>
    %32 = vector.shape_cast %31 : vector<16xf32> to vector<1x16xf32>
    %33 = vector.broadcast %32 : vector<1x16xf32> to vector<16x16xf32>
    %34 = arith.subf %30, %33 : vector<16x16xf32>
    %35 = math.exp %34 : vector<16x16xf32>
    %cst_20 = arith.constant dense<0.000000e+00> : vector<16xf32>
    %36 = vector.multi_reduction <add>, %35, %cst_20 [0] : vector<16x16xf32> to vector<16xf32>
    %37 = vector.shape_cast %36 : vector<16xf32> to vector<1x16xf32>
    %38 = vector.broadcast %37 : vector<1x16xf32> to vector<16x16xf32>
    %39 = arith.divf %35, %38 : vector<16x16xf32>
    %cst_21 = arith.constant dense<0xFF800000> : vector<16xf32>
    %40 = vector.multi_reduction <maximumf>, %39, %cst_21 [1] : vector<16x16xf32> to vector<16xf32>
    %41 = vector.shape_cast %40 : vector<16xf32> to vector<16x1xf32>
    %42 = vector.broadcast %41 : vector<16x1xf32> to vector<16x16xf32>
    %43 = arith.subf %39, %42 : vector<16x16xf32>
    %44 = math.exp %43 : vector<16x16xf32>
    %cst_22 = arith.constant dense<0.000000e+00> : vector<16xf32>
    %45 = vector.multi_reduction <add>, %44, %cst_22 [1] : vector<16x16xf32> to vector<16xf32>
    %46 = vector.shape_cast %45 : vector<16xf32> to vector<16x1xf32>
    %47 = vector.broadcast %46 : vector<16x1xf32> to vector<16x16xf32>
    %48 = arith.divf %44, %47 : vector<16x16xf32>
    %cst_23 = arith.constant dense<0.000000e+00> : vector<16x8xf32>
    %49 = tpu.matmul %48, %27, %cst_23 {dimension_numbers = #tpu.dot_dimension_numbers<[1], [0], [0], [1], [0, 0, 1, 1], [], []>} : vector<16x16xf32>, vector<16x8xf32>, vector<16x8xf32> -> vector<16x8xf32>
    %50 = vector.extract_strided_slice %15 {offsets = [0, 0], sizes = [8, 32], strides = [1, 1]} : vector<32x32xf32> to vector<8x32xf32>
    %cst_24 = arith.constant dense<0.000000e+00> : vector<16x32xf32>
    %51 = tpu.matmul %49, %50, %cst_24 {dimension_numbers = #tpu.dot_dimension_numbers<[1], [0], [0], [1], [0, 0, 1, 1], [], []>} : vector<16x8xf32>, vector<8x32xf32>, vector<16x32xf32> -> vector<16x32xf32>
    %52 = arith.addf %24, %51 : vector<16x32xf32>
    %53 = vector.extract_strided_slice %14 {offsets = [0, 8], sizes = [16, 8], strides = [1, 1]} : vector<32x96xf32> to vector<16x8xf32>
    %54 = vector.extract_strided_slice %14 {offsets = [0, 40], sizes = [16, 8], strides = [1, 1]} : vector<32x96xf32> to vector<16x8xf32>
    %55 = vector.extract_strided_slice %14 {offsets = [0, 72], sizes = [16, 8], strides = [1, 1]} : vector<32x96xf32> to vector<16x8xf32>
    %cst_25 = arith.constant dense<0.000000e+00> : vector<16x16xf32>
    %56 = tpu.matmul %53, %54, %cst_25 {dimension_numbers = #tpu.dot_dimension_numbers<[1], [1], [0], [0], [0, 0, 1, 0], [], []>} : vector<16x8xf32>, vector<16x8xf32>, vector<16x16xf32> -> vector<16x16xf32>
    %cst_26 = arith.constant 0.176776692 : f32
    %57 = vector.broadcast %cst_26 : f32 to vector<16x16xf32>
    %58 = arith.mulf %56, %57 : vector<16x16xf32>
    %cst_27 = arith.constant dense<0xFF800000> : vector<16xf32>
    %59 = vector.multi_reduction <maximumf>, %58, %cst_27 [0] : vector<16x16xf32> to vector<16xf32>
    %60 = vector.shape_cast %59 : vector<16xf32> to vector<1x16xf32>
    %61 = vector.broadcast %60 : vector<1x16xf32> to vector<16x16xf32>
    %62 = arith.subf %58, %61 : vector<16x16xf32>
    %63 = math.exp %62 : vector<16x16xf32>
    %cst_28 = arith.constant dense<0.000000e+00> : vector<16xf32>
    %64 = vector.multi_reduction <add>, %63, %cst_28 [0] : vector<16x16xf32> to vector<16xf32>
    %65 = vector.shape_cast %64 : vector<16xf32> to vector<1x16xf32>
    %66 = vector.broadcast %65 : vector<1x16xf32> to vector<16x16xf32>
    %67 = arith.divf %63, %66 : vector<16x16xf32>
    %cst_29 = arith.constant dense<0xFF800000> : vector<16xf32>
    %68 = vector.multi_reduction <maximumf>, %67, %cst_29 [1] : vector<16x16xf32> to vector<16xf32>
    %69 = vector.shape_cast %68 : vector<16xf32> to vector<16x1xf32>
    %70 = vector.broadcast %69 : vector<16x1xf32> to vector<16x16xf32>
    %71 = arith.subf %67, %70 : vector<16x16xf32>
    %72 = math.exp %71 : vector<16x16xf32>
    %cst_30 = arith.constant dense<0.000000e+00> : vector<16xf32>
    %73 = vector.multi_reduction <add>, %72, %cst_30 [1] : vector<16x16xf32> to vector<16xf32>
    %74 = vector.shape_cast %73 : vector<16xf32> to vector<16x1xf32>
    %75 = vector.broadcast %74 : vector<16x1xf32> to vector<16x16xf32>
    %76 = arith.divf %72, %75 : vector<16x16xf32>
    %cst_31 = arith.constant dense<0.000000e+00> : vector<16x8xf32>
    %77 = tpu.matmul %76, %55, %cst_31 {dimension_numbers = #tpu.dot_dimension_numbers<[1], [0], [0], [1], [0, 0, 1, 1], [], []>} : vector<16x16xf32>, vector<16x8xf32>, vector<16x8xf32> -> vector<16x8xf32>
    %78 = vector.extract_strided_slice %15 {offsets = [8, 0], sizes = [8, 32], strides = [1, 1]} : vector<32x32xf32> to vector<8x32xf32>
    %cst_32 = arith.constant dense<0.000000e+00> : vector<16x32xf32>
    %79 = tpu.matmul %77, %78, %cst_32 {dimension_numbers = #tpu.dot_dimension_numbers<[1], [0], [0], [1], [0, 0, 1, 1], [], []>} : vector<16x8xf32>, vector<8x32xf32>, vector<16x32xf32> -> vector<16x32xf32>
    %80 = arith.addf %52, %79 : vector<16x32xf32>
    %81 = vector.extract_strided_slice %14 {offsets = [0, 16], sizes = [16, 8], strides = [1, 1]} : vector<32x96xf32> to vector<16x8xf32>
    %82 = vector.extract_strided_slice %14 {offsets = [0, 48], sizes = [16, 8], strides = [1, 1]} : vector<32x96xf32> to vector<16x8xf32>
    %83 = vector.extract_strided_slice %14 {offsets = [0, 80], sizes = [16, 8], strides = [1, 1]} : vector<32x96xf32> to vector<16x8xf32>
    %cst_33 = arith.constant dense<0.000000e+00> : vector<16x16xf32>
    %84 = tpu.matmul %81, %82, %cst_33 {dimension_numbers = #tpu.dot_dimension_numbers<[1], [1], [0], [0], [0, 0, 1, 0], [], []>} : vector<16x8xf32>, vector<16x8xf32>, vector<16x16xf32> -> vector<16x16xf32>
    %cst_34 = arith.constant 0.176776692 : f32
    %85 = vector.broadcast %cst_34 : f32 to vector<16x16xf32>
    %86 = arith.mulf %84, %85 : vector<16x16xf32>
    %cst_35 = arith.constant dense<0xFF800000> : vector<16xf32>
    %87 = vector.multi_reduction <maximumf>, %86, %cst_35 [0] : vector<16x16xf32> to vector<16xf32>
    %88 = vector.shape_cast %87 : vector<16xf32> to vector<1x16xf32>
    %89 = vector.broadcast %88 : vector<1x16xf32> to vector<16x16xf32>
    %90 = arith.subf %86, %89 : vector<16x16xf32>
    %91 = math.exp %90 : vector<16x16xf32>
    %cst_36 = arith.constant dense<0.000000e+00> : vector<16xf32>
    %92 = vector.multi_reduction <add>, %91, %cst_36 [0] : vector<16x16xf32> to vector<16xf32>
    %93 = vector.shape_cast %92 : vector<16xf32> to vector<1x16xf32>
    %94 = vector.broadcast %93 : vector<1x16xf32> to vector<16x16xf32>
    %95 = arith.divf %91, %94 : vector<16x16xf32>
    %cst_37 = arith.constant dense<0xFF800000> : vector<16xf32>
    %96 = vector.multi_reduction <maximumf>, %95, %cst_37 [1] : vector<16x16xf32> to vector<16xf32>
    %97 = vector.shape_cast %96 : vector<16xf32> to vector<16x1xf32>
    %98 = vector.broadcast %97 : vector<16x1xf32> to vector<16x16xf32>
    %99 = arith.subf %95, %98 : vector<16x16xf32>
    %100 = math.exp %99 : vector<16x16xf32>
    %cst_38 = arith.constant dense<0.000000e+00> : vector<16xf32>
    %101 = vector.multi_reduction <add>, %100, %cst_38 [1] : vector<16x16xf32> to vector<16xf32>
    %102 = vector.shape_cast %101 : vector<16xf32> to vector<16x1xf32>
    %103 = vector.broadcast %102 : vector<16x1xf32> to vector<16x16xf32>
    %104 = arith.divf %100, %103 : vector<16x16xf32>
    %cst_39 = arith.constant dense<0.000000e+00> : vector<16x8xf32>
    %105 = tpu.matmul %104, %83, %cst_39 {dimension_numbers = #tpu.dot_dimension_numbers<[1], [0], [0], [1], [0, 0, 1, 1], [], []>} : vector<16x16xf32>, vector<16x8xf32>, vector<16x8xf32> -> vector<16x8xf32>
    %106 = vector.extract_strided_slice %15 {offsets = [16, 0], sizes = [8, 32], strides = [1, 1]} : vector<32x32xf32> to vector<8x32xf32>
    %cst_40 = arith.constant dense<0.000000e+00> : vector<16x32xf32>
    %107 = tpu.matmul %105, %106, %cst_40 {dimension_numbers = #tpu.dot_dimension_numbers<[1], [0], [0], [1], [0, 0, 1, 1], [], []>} : vector<16x8xf32>, vector<8x32xf32>, vector<16x32xf32> -> vector<16x32xf32>
    %108 = arith.addf %80, %107 : vector<16x32xf32>
    %109 = vector.extract_strided_slice %14 {offsets = [0, 24], sizes = [16, 8], strides = [1, 1]} : vector<32x96xf32> to vector<16x8xf32>
    %110 = vector.extract_strided_slice %14 {offsets = [0, 56], sizes = [16, 8], strides = [1, 1]} : vector<32x96xf32> to vector<16x8xf32>
    %111 = vector.extract_strided_slice %14 {offsets = [0, 88], sizes = [16, 8], strides = [1, 1]} : vector<32x96xf32> to vector<16x8xf32>
    %cst_41 = arith.constant dense<0.000000e+00> : vector<16x16xf32>
    %112 = tpu.matmul %109, %110, %cst_41 {dimension_numbers = #tpu.dot_dimension_numbers<[1], [1], [0], [0], [0, 0, 1, 0], [], []>} : vector<16x8xf32>, vector<16x8xf32>, vector<16x16xf32> -> vector<16x16xf32>
    %cst_42 = arith.constant 0.176776692 : f32
    %113 = vector.broadcast %cst_42 : f32 to vector<16x16xf32>
    %114 = arith.mulf %112, %113 : vector<16x16xf32>
    %cst_43 = arith.constant dense<0xFF800000> : vector<16xf32>
    %115 = vector.multi_reduction <maximumf>, %114, %cst_43 [0] : vector<16x16xf32> to vector<16xf32>
    %116 = vector.shape_cast %115 : vector<16xf32> to vector<1x16xf32>
    %117 = vector.broadcast %116 : vector<1x16xf32> to vector<16x16xf32>
    %118 = arith.subf %114, %117 : vector<16x16xf32>
    %119 = math.exp %118 : vector<16x16xf32>
    %cst_44 = arith.constant dense<0.000000e+00> : vector<16xf32>
    %120 = vector.multi_reduction <add>, %119, %cst_44 [0] : vector<16x16xf32> to vector<16xf32>
    %121 = vector.shape_cast %120 : vector<16xf32> to vector<1x16xf32>
    %122 = vector.broadcast %121 : vector<1x16xf32> to vector<16x16xf32>
    %123 = arith.divf %119, %122 : vector<16x16xf32>
    %cst_45 = arith.constant dense<0xFF800000> : vector<16xf32>
    %124 = vector.multi_reduction <maximumf>, %123, %cst_45 [1] : vector<16x16xf32> to vector<16xf32>
    %125 = vector.shape_cast %124 : vector<16xf32> to vector<16x1xf32>
    %126 = vector.broadcast %125 : vector<16x1xf32> to vector<16x16xf32>
    %127 = arith.subf %123, %126 : vector<16x16xf32>
    %128 = math.exp %127 : vector<16x16xf32>
    %cst_46 = arith.constant dense<0.000000e+00> : vector<16xf32>
    %129 = vector.multi_reduction <add>, %128, %cst_46 [1] : vector<16x16xf32> to vector<16xf32>
    %130 = vector.shape_cast %129 : vector<16xf32> to vector<16x1xf32>
    %131 = vector.broadcast %130 : vector<16x1xf32> to vector<16x16xf32>
    %132 = arith.divf %128, %131 : vector<16x16xf32>
    %cst_47 = arith.constant dense<0.000000e+00> : vector<16x8xf32>
    %133 = tpu.matmul %132, %111, %cst_47 {dimension_numbers = #tpu.dot_dimension_numbers<[1], [0], [0], [1], [0, 0, 1, 1], [], []>} : vector<16x16xf32>, vector<16x8xf32>, vector<16x8xf32> -> vector<16x8xf32>
    %134 = vector.extract_strided_slice %15 {offsets = [24, 0], sizes = [8, 32], strides = [1, 1]} : vector<32x32xf32> to vector<8x32xf32>
    %cst_48 = arith.constant dense<0.000000e+00> : vector<16x32xf32>
    %135 = tpu.matmul %133, %134, %cst_48 {dimension_numbers = #tpu.dot_dimension_numbers<[1], [0], [0], [1], [0, 0, 1, 1], [], []>} : vector<16x8xf32>, vector<8x32xf32>, vector<16x32xf32> -> vector<16x32xf32>
    %136 = arith.addf %108, %135 : vector<16x32xf32>
    %137 = arith.addf %136, %21 : vector<16x32xf32>
    %138 = vector.extract_strided_slice %17 {offsets = [0, 0], sizes = [16, 32], strides = [1, 1]} : vector<32x32xf32> to vector<16x32xf32>
    %139 = arith.mulf %137, %138 : vector<16x32xf32>
    %140 = vector.shape_cast %139 : vector<16x32xf32> to vector<1x16x32xf32>
    %cst_49 = arith.constant dense<0.000000e+00> : vector<1xf32>
    %141 = vector.multi_reduction <add>, %140, %cst_49 [1, 2] : vector<1x16x32xf32> to vector<1xf32>
    %142 = vector.shape_cast %141 : vector<1xf32> to vector<1x1x1xf32>
    %143 = vector.extract %142[0, 0, 0] : f32 from vector<1x1x1xf32>
    %144 = vector.broadcast %143 : f32 to vector<1x1xf32>
    %c0_i32 = arith.constant 0 : i32
    %145 = vector.broadcast %c0_i32 : i32 to vector<2x2xi32>
    %146 = arith.cmpi eq, %18, %145 : vector<2x2xi32>
    %c0_i32_50 = arith.constant 0 : i32
    %147 = vector.broadcast %c0_i32_50 : i32 to vector<2x2xi32>
    %148 = arith.cmpi eq, %19, %147 : vector<2x2xi32>
    %149 = arith.andi %146, %148 : vector<2x2xi1>
    %150 = vector.shape_cast %144 : vector<1x1xf32> to vector<1x1xf32>
    %151 = vector.broadcast %150 : vector<1x1xf32> to vector<2x2xf32>
    %152 = arith.select %149, %151, %20 : vector<2x2xi1>, vector<2x2xf32>
    %153 = vector.extract_strided_slice %17 {offsets = [16, 0], sizes = [16, 32], strides = [1, 1]} : vector<32x32xf32> to vector<16x32xf32>
    %154 = arith.mulf %137, %153 : vector<16x32xf32>
    %155 = vector.shape_cast %154 : vector<16x32xf32> to vector<1x16x32xf32>
    %cst_51 = arith.constant dense<0.000000e+00> : vector<1xf32>
    %156 = vector.multi_reduction <add>, %155, %cst_51 [1, 2] : vector<1x16x32xf32> to vector<1xf32>
    %157 = vector.shape_cast %156 : vector<1xf32> to vector<1x1x1xf32>
    %158 = vector.extract %157[0, 0, 0] : f32 from vector<1x1x1xf32>
    %159 = vector.broadcast %158 : f32 to vector<1x1xf32>
    %c0_i32_52 = arith.constant 0 : i32
    %160 = vector.broadcast %c0_i32_52 : i32 to vector<2x2xi32>
    %161 = arith.cmpi eq, %18, %160 : vector<2x2xi32>
    %c1_i32 = arith.constant 1 : i32
    %162 = vector.broadcast %c1_i32 : i32 to vector<2x2xi32>
    %163 = arith.cmpi eq, %19, %162 : vector<2x2xi32>
    %164 = arith.andi %161, %163 : vector<2x2xi1>
    %165 = vector.shape_cast %159 : vector<1x1xf32> to vector<1x1xf32>
    %166 = vector.broadcast %165 : vector<1x1xf32> to vector<2x2xf32>
    %167 = arith.select %164, %166, %152 : vector<2x2xi1>, vector<2x2xf32>
    %168 = vector.extract_strided_slice %7 {offsets = [16, 0], sizes = [16, 32], strides = [1, 1]} : vector<32x32xf32> to vector<16x32xf32>
    %cst_53 = arith.constant 0.000000e+00 : f32
    %169 = vector.broadcast %cst_53 : f32 to vector<16x32xf32>
    %170 = vector.broadcast %16 : vector<1x32xf32> to vector<16x32xf32>
    %171 = arith.addf %169, %170 : vector<16x32xf32>
    %172 = vector.extract_strided_slice %14 {offsets = [16, 0], sizes = [16, 8], strides = [1, 1]} : vector<32x96xf32> to vector<16x8xf32>
    %173 = vector.extract_strided_slice %14 {offsets = [16, 32], sizes = [16, 8], strides = [1, 1]} : vector<32x96xf32> to vector<16x8xf32>
    %174 = vector.extract_strided_slice %14 {offsets = [16, 64], sizes = [16, 8], strides = [1, 1]} : vector<32x96xf32> to vector<16x8xf32>
    %cst_54 = arith.constant dense<0.000000e+00> : vector<16x16xf32>
    %175 = tpu.matmul %172, %173, %cst_54 {dimension_numbers = #tpu.dot_dimension_numbers<[1], [1], [0], [0], [0, 0, 1, 0], [], []>} : vector<16x8xf32>, vector<16x8xf32>, vector<16x16xf32> -> vector<16x16xf32>
    %cst_55 = arith.constant 0.176776692 : f32
    %176 = vector.broadcast %cst_55 : f32 to vector<16x16xf32>
    %177 = arith.mulf %175, %176 : vector<16x16xf32>
    %cst_56 = arith.constant dense<0xFF800000> : vector<16xf32>
    %178 = vector.multi_reduction <maximumf>, %177, %cst_56 [0] : vector<16x16xf32> to vector<16xf32>
    %179 = vector.shape_cast %178 : vector<16xf32> to vector<1x16xf32>
    %180 = vector.broadcast %179 : vector<1x16xf32> to vector<16x16xf32>
    %181 = arith.subf %177, %180 : vector<16x16xf32>
    %182 = math.exp %181 : vector<16x16xf32>
    %cst_57 = arith.constant dense<0.000000e+00> : vector<16xf32>
    %183 = vector.multi_reduction <add>, %182, %cst_57 [0] : vector<16x16xf32> to vector<16xf32>
    %184 = vector.shape_cast %183 : vector<16xf32> to vector<1x16xf32>
    %185 = vector.broadcast %184 : vector<1x16xf32> to vector<16x16xf32>
    %186 = arith.divf %182, %185 : vector<16x16xf32>
    %cst_58 = arith.constant dense<0xFF800000> : vector<16xf32>
    %187 = vector.multi_reduction <maximumf>, %186, %cst_58 [1] : vector<16x16xf32> to vector<16xf32>
    %188 = vector.shape_cast %187 : vector<16xf32> to vector<16x1xf32>
    %189 = vector.broadcast %188 : vector<16x1xf32> to vector<16x16xf32>
    %190 = arith.subf %186, %189 : vector<16x16xf32>
    %191 = math.exp %190 : vector<16x16xf32>
    %cst_59 = arith.constant dense<0.000000e+00> : vector<16xf32>
    %192 = vector.multi_reduction <add>, %191, %cst_59 [1] : vector<16x16xf32> to vector<16xf32>
    %193 = vector.shape_cast %192 : vector<16xf32> to vector<16x1xf32>
    %194 = vector.broadcast %193 : vector<16x1xf32> to vector<16x16xf32>
    %195 = arith.divf %191, %194 : vector<16x16xf32>
    %cst_60 = arith.constant dense<0.000000e+00> : vector<16x8xf32>
    %196 = tpu.matmul %195, %174, %cst_60 {dimension_numbers = #tpu.dot_dimension_numbers<[1], [0], [0], [1], [0, 0, 1, 1], [], []>} : vector<16x16xf32>, vector<16x8xf32>, vector<16x8xf32> -> vector<16x8xf32>
    %197 = vector.extract_strided_slice %15 {offsets = [0, 0], sizes = [8, 32], strides = [1, 1]} : vector<32x32xf32> to vector<8x32xf32>
    %cst_61 = arith.constant dense<0.000000e+00> : vector<16x32xf32>
    %198 = tpu.matmul %196, %197, %cst_61 {dimension_numbers = #tpu.dot_dimension_numbers<[1], [0], [0], [1], [0, 0, 1, 1], [], []>} : vector<16x8xf32>, vector<8x32xf32>, vector<16x32xf32> -> vector<16x32xf32>
    %199 = arith.addf %171, %198 : vector<16x32xf32>
    %200 = vector.extract_strided_slice %14 {offsets = [16, 8], sizes = [16, 8], strides = [1, 1]} : vector<32x96xf32> to vector<16x8xf32>
    %201 = vector.extract_strided_slice %14 {offsets = [16, 40], sizes = [16, 8], strides = [1, 1]} : vector<32x96xf32> to vector<16x8xf32>
    %202 = vector.extract_strided_slice %14 {offsets = [16, 72], sizes = [16, 8], strides = [1, 1]} : vector<32x96xf32> to vector<16x8xf32>
    %cst_62 = arith.constant dense<0.000000e+00> : vector<16x16xf32>
    %203 = tpu.matmul %200, %201, %cst_62 {dimension_numbers = #tpu.dot_dimension_numbers<[1], [1], [0], [0], [0, 0, 1, 0], [], []>} : vector<16x8xf32>, vector<16x8xf32>, vector<16x16xf32> -> vector<16x16xf32>
    %cst_63 = arith.constant 0.176776692 : f32
    %204 = vector.broadcast %cst_63 : f32 to vector<16x16xf32>
    %205 = arith.mulf %203, %204 : vector<16x16xf32>
    %cst_64 = arith.constant dense<0xFF800000> : vector<16xf32>
    %206 = vector.multi_reduction <maximumf>, %205, %cst_64 [0] : vector<16x16xf32> to vector<16xf32>
    %207 = vector.shape_cast %206 : vector<16xf32> to vector<1x16xf32>
    %208 = vector.broadcast %207 : vector<1x16xf32> to vector<16x16xf32>
    %209 = arith.subf %205, %208 : vector<16x16xf32>
    %210 = math.exp %209 : vector<16x16xf32>
    %cst_65 = arith.constant dense<0.000000e+00> : vector<16xf32>
    %211 = vector.multi_reduction <add>, %210, %cst_65 [0] : vector<16x16xf32> to vector<16xf32>
    %212 = vector.shape_cast %211 : vector<16xf32> to vector<1x16xf32>
    %213 = vector.broadcast %212 : vector<1x16xf32> to vector<16x16xf32>
    %214 = arith.divf %210, %213 : vector<16x16xf32>
    %cst_66 = arith.constant dense<0xFF800000> : vector<16xf32>
    %215 = vector.multi_reduction <maximumf>, %214, %cst_66 [1] : vector<16x16xf32> to vector<16xf32>
    %216 = vector.shape_cast %215 : vector<16xf32> to vector<16x1xf32>
    %217 = vector.broadcast %216 : vector<16x1xf32> to vector<16x16xf32>
    %218 = arith.subf %214, %217 : vector<16x16xf32>
    %219 = math.exp %218 : vector<16x16xf32>
    %cst_67 = arith.constant dense<0.000000e+00> : vector<16xf32>
    %220 = vector.multi_reduction <add>, %219, %cst_67 [1] : vector<16x16xf32> to vector<16xf32>
    %221 = vector.shape_cast %220 : vector<16xf32> to vector<16x1xf32>
    %222 = vector.broadcast %221 : vector<16x1xf32> to vector<16x16xf32>
    %223 = arith.divf %219, %222 : vector<16x16xf32>
    %cst_68 = arith.constant dense<0.000000e+00> : vector<16x8xf32>
    %224 = tpu.matmul %223, %202, %cst_68 {dimension_numbers = #tpu.dot_dimension_numbers<[1], [0], [0], [1], [0, 0, 1, 1], [], []>} : vector<16x16xf32>, vector<16x8xf32>, vector<16x8xf32> -> vector<16x8xf32>
    %225 = vector.extract_strided_slice %15 {offsets = [8, 0], sizes = [8, 32], strides = [1, 1]} : vector<32x32xf32> to vector<8x32xf32>
    %cst_69 = arith.constant dense<0.000000e+00> : vector<16x32xf32>
    %226 = tpu.matmul %224, %225, %cst_69 {dimension_numbers = #tpu.dot_dimension_numbers<[1], [0], [0], [1], [0, 0, 1, 1], [], []>} : vector<16x8xf32>, vector<8x32xf32>, vector<16x32xf32> -> vector<16x32xf32>
    %227 = arith.addf %199, %226 : vector<16x32xf32>
    %228 = vector.extract_strided_slice %14 {offsets = [16, 16], sizes = [16, 8], strides = [1, 1]} : vector<32x96xf32> to vector<16x8xf32>
    %229 = vector.extract_strided_slice %14 {offsets = [16, 48], sizes = [16, 8], strides = [1, 1]} : vector<32x96xf32> to vector<16x8xf32>
    %230 = vector.extract_strided_slice %14 {offsets = [16, 80], sizes = [16, 8], strides = [1, 1]} : vector<32x96xf32> to vector<16x8xf32>
    %cst_70 = arith.constant dense<0.000000e+00> : vector<16x16xf32>
    %231 = tpu.matmul %228, %229, %cst_70 {dimension_numbers = #tpu.dot_dimension_numbers<[1], [1], [0], [0], [0, 0, 1, 0], [], []>} : vector<16x8xf32>, vector<16x8xf32>, vector<16x16xf32> -> vector<16x16xf32>
    %cst_71 = arith.constant 0.176776692 : f32
    %232 = vector.broadcast %cst_71 : f32 to vector<16x16xf32>
    %233 = arith.mulf %231, %232 : vector<16x16xf32>
    %cst_72 = arith.constant dense<0xFF800000> : vector<16xf32>
    %234 = vector.multi_reduction <maximumf>, %233, %cst_72 [0] : vector<16x16xf32> to vector<16xf32>
    %235 = vector.shape_cast %234 : vector<16xf32> to vector<1x16xf32>
    %236 = vector.broadcast %235 : vector<1x16xf32> to vector<16x16xf32>
    %237 = arith.subf %233, %236 : vector<16x16xf32>
    %238 = math.exp %237 : vector<16x16xf32>
    %cst_73 = arith.constant dense<0.000000e+00> : vector<16xf32>
    %239 = vector.multi_reduction <add>, %238, %cst_73 [0] : vector<16x16xf32> to vector<16xf32>
    %240 = vector.shape_cast %239 : vector<16xf32> to vector<1x16xf32>
    %241 = vector.broadcast %240 : vector<1x16xf32> to vector<16x16xf32>
    %242 = arith.divf %238, %241 : vector<16x16xf32>
    %cst_74 = arith.constant dense<0xFF800000> : vector<16xf32>
    %243 = vector.multi_reduction <maximumf>, %242, %cst_74 [1] : vector<16x16xf32> to vector<16xf32>
    %244 = vector.shape_cast %243 : vector<16xf32> to vector<16x1xf32>
    %245 = vector.broadcast %244 : vector<16x1xf32> to vector<16x16xf32>
    %246 = arith.subf %242, %245 : vector<16x16xf32>
    %247 = math.exp %246 : vector<16x16xf32>
    %cst_75 = arith.constant dense<0.000000e+00> : vector<16xf32>
    %248 = vector.multi_reduction <add>, %247, %cst_75 [1] : vector<16x16xf32> to vector<16xf32>
    %249 = vector.shape_cast %248 : vector<16xf32> to vector<16x1xf32>
    %250 = vector.broadcast %249 : vector<16x1xf32> to vector<16x16xf32>
    %251 = arith.divf %247, %250 : vector<16x16xf32>
    %cst_76 = arith.constant dense<0.000000e+00> : vector<16x8xf32>
    %252 = tpu.matmul %251, %230, %cst_76 {dimension_numbers = #tpu.dot_dimension_numbers<[1], [0], [0], [1], [0, 0, 1, 1], [], []>} : vector<16x16xf32>, vector<16x8xf32>, vector<16x8xf32> -> vector<16x8xf32>
    %253 = vector.extract_strided_slice %15 {offsets = [16, 0], sizes = [8, 32], strides = [1, 1]} : vector<32x32xf32> to vector<8x32xf32>
    %cst_77 = arith.constant dense<0.000000e+00> : vector<16x32xf32>
    %254 = tpu.matmul %252, %253, %cst_77 {dimension_numbers = #tpu.dot_dimension_numbers<[1], [0], [0], [1], [0, 0, 1, 1], [], []>} : vector<16x8xf32>, vector<8x32xf32>, vector<16x32xf32> -> vector<16x32xf32>
    %255 = arith.addf %227, %254 : vector<16x32xf32>
    %256 = vector.extract_strided_slice %14 {offsets = [16, 24], sizes = [16, 8], strides = [1, 1]} : vector<32x96xf32> to vector<16x8xf32>
    %257 = vector.extract_strided_slice %14 {offsets = [16, 56], sizes = [16, 8], strides = [1, 1]} : vector<32x96xf32> to vector<16x8xf32>
    %258 = vector.extract_strided_slice %14 {offsets = [16, 88], sizes = [16, 8], strides = [1, 1]} : vector<32x96xf32> to vector<16x8xf32>
    %cst_78 = arith.constant dense<0.000000e+00> : vector<16x16xf32>
    %259 = tpu.matmul %256, %257, %cst_78 {dimension_numbers = #tpu.dot_dimension_numbers<[1], [1], [0], [0], [0, 0, 1, 0], [], []>} : vector<16x8xf32>, vector<16x8xf32>, vector<16x16xf32> -> vector<16x16xf32>
    %cst_79 = arith.constant 0.176776692 : f32
    %260 = vector.broadcast %cst_79 : f32 to vector<16x16xf32>
    %261 = arith.mulf %259, %260 : vector<16x16xf32>
    %cst_80 = arith.constant dense<0xFF800000> : vector<16xf32>
    %262 = vector.multi_reduction <maximumf>, %261, %cst_80 [0] : vector<16x16xf32> to vector<16xf32>
    %263 = vector.shape_cast %262 : vector<16xf32> to vector<1x16xf32>
    %264 = vector.broadcast %263 : vector<1x16xf32> to vector<16x16xf32>
    %265 = arith.subf %261, %264 : vector<16x16xf32>
    %266 = math.exp %265 : vector<16x16xf32>
    %cst_81 = arith.constant dense<0.000000e+00> : vector<16xf32>
    %267 = vector.multi_reduction <add>, %266, %cst_81 [0] : vector<16x16xf32> to vector<16xf32>
    %268 = vector.shape_cast %267 : vector<16xf32> to vector<1x16xf32>
    %269 = vector.broadcast %268 : vector<1x16xf32> to vector<16x16xf32>
    %270 = arith.divf %266, %269 : vector<16x16xf32>
    %cst_82 = arith.constant dense<0xFF800000> : vector<16xf32>
    %271 = vector.multi_reduction <maximumf>, %270, %cst_82 [1] : vector<16x16xf32> to vector<16xf32>
    %272 = vector.shape_cast %271 : vector<16xf32> to vector<16x1xf32>
    %273 = vector.broadcast %272 : vector<16x1xf32> to vector<16x16xf32>
    %274 = arith.subf %270, %273 : vector<16x16xf32>
    %275 = math.exp %274 : vector<16x16xf32>
    %cst_83 = arith.constant dense<0.000000e+00> : vector<16xf32>
    %276 = vector.multi_reduction <add>, %275, %cst_83 [1] : vector<16x16xf32> to vector<16xf32>
    %277 = vector.shape_cast %276 : vector<16xf32> to vector<16x1xf32>
    %278 = vector.broadcast %277 : vector<16x1xf32> to vector<16x16xf32>
    %279 = arith.divf %275, %278 : vector<16x16xf32>
    %cst_84 = arith.constant dense<0.000000e+00> : vector<16x8xf32>
    %280 = tpu.matmul %279, %258, %cst_84 {dimension_numbers = #tpu.dot_dimension_numbers<[1], [0], [0], [1], [0, 0, 1, 1], [], []>} : vector<16x16xf32>, vector<16x8xf32>, vector<16x8xf32> -> vector<16x8xf32>
    %281 = vector.extract_strided_slice %15 {offsets = [24, 0], sizes = [8, 32], strides = [1, 1]} : vector<32x32xf32> to vector<8x32xf32>
    %cst_85 = arith.constant dense<0.000000e+00> : vector<16x32xf32>
    %282 = tpu.matmul %280, %281, %cst_85 {dimension_numbers = #tpu.dot_dimension_numbers<[1], [0], [0], [1], [0, 0, 1, 1], [], []>} : vector<16x8xf32>, vector<8x32xf32>, vector<16x32xf32> -> vector<16x32xf32>
    %283 = arith.addf %255, %282 : vector<16x32xf32>
    %284 = arith.addf %283, %168 : vector<16x32xf32>
    %285 = vector.extract_strided_slice %17 {offsets = [0, 0], sizes = [16, 32], strides = [1, 1]} : vector<32x32xf32> to vector<16x32xf32>
    %286 = arith.mulf %284, %285 : vector<16x32xf32>
    %287 = vector.shape_cast %286 : vector<16x32xf32> to vector<1x16x32xf32>
    %cst_86 = arith.constant dense<0.000000e+00> : vector<1xf32>
    %288 = vector.multi_reduction <add>, %287, %cst_86 [1, 2] : vector<1x16x32xf32> to vector<1xf32>
    %289 = vector.shape_cast %288 : vector<1xf32> to vector<1x1x1xf32>
    %290 = vector.extract %289[0, 0, 0] : f32 from vector<1x1x1xf32>
    %291 = vector.broadcast %290 : f32 to vector<1x1xf32>
    %c1_i32_87 = arith.constant 1 : i32
    %292 = vector.broadcast %c1_i32_87 : i32 to vector<2x2xi32>
    %293 = arith.cmpi eq, %18, %292 : vector<2x2xi32>
    %c0_i32_88 = arith.constant 0 : i32
    %294 = vector.broadcast %c0_i32_88 : i32 to vector<2x2xi32>
    %295 = arith.cmpi eq, %19, %294 : vector<2x2xi32>
    %296 = arith.andi %293, %295 : vector<2x2xi1>
    %297 = vector.shape_cast %291 : vector<1x1xf32> to vector<1x1xf32>
    %298 = vector.broadcast %297 : vector<1x1xf32> to vector<2x2xf32>
    %299 = arith.select %296, %298, %167 : vector<2x2xi1>, vector<2x2xf32>
    %300 = vector.extract_strided_slice %17 {offsets = [16, 0], sizes = [16, 32], strides = [1, 1]} : vector<32x32xf32> to vector<16x32xf32>
    %301 = arith.mulf %284, %300 : vector<16x32xf32>
    %302 = vector.shape_cast %301 : vector<16x32xf32> to vector<1x16x32xf32>
    %cst_89 = arith.constant dense<0.000000e+00> : vector<1xf32>
    %303 = vector.multi_reduction <add>, %302, %cst_89 [1, 2] : vector<1x16x32xf32> to vector<1xf32>
    %304 = vector.shape_cast %303 : vector<1xf32> to vector<1x1x1xf32>
    %305 = vector.extract %304[0, 0, 0] : f32 from vector<1x1x1xf32>
    %306 = vector.broadcast %305 : f32 to vector<1x1xf32>
    %c1_i32_90 = arith.constant 1 : i32
    %307 = vector.broadcast %c1_i32_90 : i32 to vector<2x2xi32>
    %308 = arith.cmpi eq, %18, %307 : vector<2x2xi32>
    %c1_i32_91 = arith.constant 1 : i32
    %309 = vector.broadcast %c1_i32_91 : i32 to vector<2x2xi32>
    %310 = arith.cmpi eq, %19, %309 : vector<2x2xi32>
    %311 = arith.andi %308, %310 : vector<2x2xi1>
    %312 = vector.shape_cast %306 : vector<1x1xf32> to vector<1x1xf32>
    %313 = vector.broadcast %312 : vector<1x1xf32> to vector<2x2xf32>
    %314 = arith.select %311, %313, %299 : vector<2x2xi1>, vector<2x2xf32>
    %c0_92 = arith.constant 0 : index
    %c0_93 = arith.constant 0 : index
    %315 = vector.load %arg7[%c0_92, %c0_93] : memref<1x2xf32, #tpu.memory_space<vmem>>, vector<1x2xf32>
    %316 = vector.broadcast %315 : vector<1x2xf32> to vector<2x2xf32>
    %317 = arith.addf %314, %316 : vector<2x2xf32>
    %318 = arith.negf %317 : vector<2x2xf32>
    %319 = math.exp %318 : vector<2x2xf32>
    %cst_94 = arith.constant 1.000000e+00 : f32
    %320 = vector.broadcast %cst_94 : f32 to vector<2x2xf32>
    %321 = arith.addf %320, %319 : vector<2x2xf32>
    %322 = arith.divf %320, %321 : vector<2x2xf32>
    %c0_95 = arith.constant 0 : index
    %c0_96 = arith.constant 0 : index
    %323 = vector.load %arg8[%c0_95, %c0_96] : memref<2x2xf32, #tpu.memory_space<vmem>>, vector<2x2xf32>
    tpu.vector_store %arg8[%c0_95, %c0_96], %322 {strides = array<i32>} : memref<2x2xf32, #tpu.memory_space<vmem>>, vector<2x2xf32>,
    return
  }
}

</mosaic_0001>

<bundles_post_ra>
// kernel: tpu_custom_call.1
= control target key start
LH: loop header
LB: loop body
LE: loop exit
PB: predicated region body
PF: predicated region fallthrough
CT: control target
= control target key end

     0   :  { %13 = vsyncpa [#allocation3], 0  ;;  %s4179_s0 = inlined_call_operand.vmem [shape: s32[32,1], index: 0, kind: input, shape index: {}]   ;;  %s4180_s1 = inlined_call_operand.vmem [shape: f32[56,32], index: 1, kind: input, shape index: {}]   ;;  %s4181_s2 = inlined_call_operand.vmem [shape: f32[32,96], index: 2, kind: input, shape index: {}]   ;;  %s4182_s3 = inlined_call_operand.vmem [shape: f32[1,96], index: 3, kind: input, shape index: {}]   ;;  %s4183_s4 = inlined_call_operand.vmem [shape: f32[32,32], index: 4, kind: input, shape index: {}]   ;;  %s4184_s5 = inlined_call_operand.vmem [shape: f32[1,32], index: 5, kind: input, shape index: {}]   ;;  %s4185_s6 = inlined_call_operand.hbm [shape: f32[32,32], index: 6, kind: input, shape index: {}]   ;;  %s4186_s7 = inlined_call_operand.vmem [shape: f32[1,2], index: 7, kind: input, shape index: {}]   ;;  %s4187_s8 = inlined_call_operand.hbm [shape: f32[2,2], index: 8, kind: output, shape index: {}]  }
   0x1   :  { %14 = vsyncpa [#allocation4], 0  ;;  %s3671_s27 = smov [#allocation2]   ;;  %s3623_s9 = scalar_lea.hbm %s4185_s6, 512 }
   0x2   :  { %s32_s28 = sshll.u32 %s3671_s27, 4  ;;  %p3624_p0 = scmp.ne.s32.totalorder %s4185_s6, %s3623_s9  ;;  %s33_s28 = int_to_ptr.vmem [resolvable:$true] %s32_s28 }
   0x3   :  { %p3627_p1 = scmp.lt.u32.totalorder %s3623_s9, %s4185_s6 }
   0x5   :  { %p3629_p2 = pnand %p3627_p1, %p3624_p0 }
   0x7   :  { %3632 = shalt.err (!%p3629_p2)
}
   0x8   :  { %s3633_s14 = scalar_lea.vmem %s33_s28, 512  ;;  %p3638_p4 = scmp.lt.s32.totalorder %s33_s28, %s33_s28 }
   0x9   :  { %p3634_p3 = scmp.ne.s32.totalorder %s33_s28, %s3633_s14  ;;  %p3639_p5 = scmp.lt.s32.totalorder %s3633_s14, %s3633_s14 }
   0xb   :  { %p3640_p6 = por %p3639_p5, %p3638_p4 }
   0xd   :  { %p3641_p7 = pnand %p3640_p6, %p3634_p3 }
   0xf   :  { %3644 = shalt.err (!%p3641_p7)
}
  0x10   :  { %s3672_s15 = smov 128   ;;  %s3673_s16 = smov 8  }
  0x11   :  { %38 = dma.hbm_to_vmem [thread:$0]  %s4185_s6, 512, %s33_s28, [#allocation3], %s3672_s15, %s3672_s15, %s3673_s16  }
  0x12   :  { %3667 = dma.done.wait [#allocation3], 512  }
  0x13   :  { %3668 = vsyncadd [#allocation3], 4294966784  ;;  %v3674_v0 = vmov 0   ;;  %v44_v1 = vld [vmem:[%s4179_s0] sm:$0xff]  ;;  %v75_v3 = vld [vmem:[%s4180_s1 + $0x8] sm:$0xff]  ;;  %v48_v21 = vlaneseq  ;;  %vm81_vm0 = vcmask 457728  }
  0x14   :  { %3425 = vset.pattern.permute.xlu0 %v3674_v0  ;;  %3426 = vset.pattern.permute.xlu1 %v3674_v0  ;;  %v74_v2 = vld [vmem:[%s4180_s1] sm:$0xff]  ;;  %v76_v4 = vld [vmem:[%s4180_s1 + $0x10] sm:$0xff]  ;;  %v77_v5 = vld [vmem:[%s4180_s1 + $0x18] sm:$0xff]  ;;  %v3675_v24 = vmov 0.0   ;;  %vm190_vm5 = vcmask 261120   ;;  %vm316_vm6 = vcmask 64512  }
  0x15   :  { %51 = vperm.xlu0 %3425, %v44_v1   ;;  %v45_v6 = vld [vmem:[%s4179_s0 + $0x8] sm:$0xff]  ;;  %v3284_v7 = vpack.c.bf16 %v75_v3, %v74_v2  ;;  %v3288_v8 = vpack.c.bf16 %v77_v5, %v76_v4  ;;  %v78_v9 = vld [vmem:[%s4180_s1 + $0x20] sm:$0xff]  ;;  %v46_v12 = vld [vmem:[%s4179_s0 + $0x10] sm:$0xff]  ;;  %v3791_v22 = vand.u32 127, %v48_v21  ;;  %vm402_vm8 = vcmask 130048   ;;  %s3678_s6 = smov 120  }
  0x16   :  { %v79_v10 = vld [vmem:[%s4180_s1 + $0x28] sm:$0xff]  ;;  %v179_v13 = vld [vmem:[%s4181_s2] sm:$0xff]  ;;  %57 = vperm.xlu1 %3426, %v46_v12   ;;  %v47_v15 = vld [vmem:[%s4179_s0 + $0x18] sm:$0xff]  ;;  %s3679_s26 = smov 80   ;;  %s3680_s27 = smov 64  }
  0x17   :  { %3285 = vmatprep.subr.bf16.mxu0 %v3284_v7  ;;  %v3292_v11 = vpack.c.bf16 %v79_v10, %v78_v9  ;;  %v180_v14 = vld [vmem:[%s4181_s2 + $0x8] sm:$0xff]  ;;  %v181_v17 = vld [vmem:[%s4181_s2 + $0x10] sm:$0xff]  ;;  %v182_v18 = vld [vmem:[%s4181_s2 + $0x18] sm:$0xff]  ;;  %s3676_s2 = smov 96   ;;  %s3681_s28 = smov 112   ;;  %vm1575_vm10 = vcmp.eq.s32.totalorder %v3791_v22, 0 }
  0x18   :  { %3287 = vmatpush3.bf16.msra.mxu0 %v3284_v7  ;;  %v3296_v16 = vpack.c.bf16 %v180_v14, %v179_v13  ;;  %v3300_v19 = vpack.c.bf16 %v182_v18, %v181_v17  ;;  %v80_v20 = vld [vmem:[%s4180_s1 + $0x30] sm:$0xff]  ;;  %v3820_v36 = vld [vmem:[%s4182_s3] ss:$0 sm:$0xff]  ;;  %vm3842_vm7 = vmpackc.low %vm316_vm6, %vm316_vm6  ;;  %s3677_s3 = smov 88   ;;  %s3682_s9 = smov 72   ;;  %vm1593_vm12 = vcmp.eq.s32.totalorder %v3791_v22, 1 }
  0x19   :  { %54 = vperm.xlu0 %3425, %v45_v6   ;;  %3289 = vmatprep.subr.bf16.mxu0 %v3288_v8  ;;  %s3683_s10 = smov 104   ;;  %s3684_s11 = smov 56  }
  0x1a   :  { %3297 = vmatprep.subr.bf16.mxu1 %v3296_v16  ;;  %60 = vperm.xlu1 %3426, %v47_v15   ;;  %s3685_s14 = smov 48   ;;  %s3686_s17 = smov 40  }
  0x1b   :  { %3299 = vmatpush3.bf16.msra.mxu1 %v3296_v16  ;;  %s3687_s0 = smov [#allocation5]  }
  0x1c   :  { %3291 = vmatpush3.bf16.msra.mxu0 %v3288_v8  ;;  %3301 = vmatprep.subr.bf16.mxu1 %v3300_v19  ;;  %s2902_s1 = sshll.u32 %s3687_s0, 4  ;;  %s2903_s1 = int_to_ptr.vmem [resolvable:$true] %s2902_s1 }
  0x1d   :  { %3293 = vmatprep.subr.bf16.mxu0 %v3292_v11  ;;  %p3650_p9 = scmp.lt.s32.totalorder %s2903_s1, %s2903_s1 }
  0x1f   :  { %3303 = vmatpush3.bf16.msra.mxu1 %v3300_v19 }
  0x20   :  { %3295 = vmatpush3.bf16.msra.mxu0 %v3292_v11 }
  0x21   :  { %3110 = vmatprep.subr.mxu0 %v80_v20 }
  0x24   :  { %3111 = vmatpush3.msra.mxu0 %v80_v20 }
  0x94   :  { %v52_v23 = vpop.permute.xlu0 %51 }
  0x95   :  { %vm62_vm1 = vcmp.eq.s32.totalorder %v3791_v22, %v52_v23  ;;  %v58_v28 = vpop.permute.xlu1 %57 }
  0x96   :  { %v2911_v25 = vsel %vm62_vm1, 1.0, %v3675_v24  ;;  %vm64_vm3 = vcmp.eq.s32.totalorder %v3791_v22, %v58_v28  ;;  %vm2894_vm1 = vcmask 9216  }
  0x97   :  { %3112 = vmatprep.mubr.msk.f32.mxu0 %vm81_vm0, %v2911_v25  ;;  %v2913_v29 = vsel %vm64_vm3, 1.0, %v3675_v24 }
  0x98   :  { %v55_v26 = vpop.permute.xlu0 %54 }
  0x99   :  { %vm63_vm2 = vcmp.eq.s32.totalorder %v3791_v22, %v55_v26  ;;  %v61_v30 = vpop.permute.xlu1 %60 }
  0x9a   :  { %v2912_v27 = vsel %vm63_vm2, 1.0, %v3675_v24  ;;  %vm65_vm4 = vcmp.eq.s32.totalorder %v3791_v22, %v61_v30 }
  0x9b   :  { %3113 = vmatmul.mubr.msk.f32.vlgmr.msra.gmra.mrb[0].mxu0 %vm81_vm0, %v2912_v27  ;;  %v2914_v31 = vsel %vm65_vm4, 1.0, %v3675_v24 }
  0x9c   :  { %3115 = vmatprep.mubr.msk.f32.mxu0 %vm81_vm0, %v2913_v29 }
  0x9f   :  { %3116 = vmatmul.mubr.msk.f32.gmra.mrb[2].mxu0 %vm81_vm0, %v2914_v31 }
 0x16e   :  { %v3801_v32 = vpop.f32.mrb[0].mxu0 }
 0x16f   :  { %v3803_v33 = vpop.f32.mrb[1].mxu0 }
 0x170   :  { %3126 = vmatprep.mubr.msk.f32.mxu1 %vm190_vm5, %v3803_v33 }
 0x171   :  { %3127 = vmatmul.mubr.msk.f32.vlgmr.msra.gmra.mrb[0].mxu1 %vm190_vm5, %v3801_v32 }
 0x172   :  { %v3809_v34 = vpop.f32.mrb[2].mxu0 }
 0x173   :  { %v3811_v35 = vpop.f32.mrb[3].mxu0 }
 0x174   :  { %3129 = vmatprep.mubr.msk.f32.mxu1 %vm190_vm5, %v3811_v35 }
 0x175   :  { %3130 = vmatmul.mubr.msk.f32.gmra.mrb[2].mxu1 %vm190_vm5, %v3809_v34 }
 0x244   :  { %v3128_v37 = vpop.f32.mrb[0].mxu1 }
 0x245   :  { %v275_v38 = vadd.f32 %v3128_v37, %v3820_v36  ;;  %v269_v39 = vpop.f32.mrb[1].mxu1 }
 0x246   :  { %v270_v40 = vadd.f32 %v3820_v36, %v269_v39 }
 0x247   :  { %v3824_v41 = vmax.f32 %v275_v38, 0.0 }
 0x248   :  { %v3826_v42 = vmax.f32 %v270_v40, 0.0  ;;  %v3836_v44 = vpop.f32.mrb[2].mxu1 }
 0x249   :  { %v3838_v45 = vpop.f32.mrb[3].mxu1 }
 0x24a   :  { %3136 = vmatprep.mubr.msk.f32.mxu1 %vm316_vm6, %v3826_v42  ;;  %v3832_v43 = vpack.i.bf16 %v3824_v41, %v3826_v42 }
 0x24c   :  { %3428 = vrot.lane.b32.xlu0 %v3832_v43, %s3676_s2 }
 0x2be   :  { %v3429_v46 = vpop.permute.xlu0 %3428 }
 0x2bf   :  { %v3431_v47 = vunpack.i.h.bf16 %v3429_v46  ;;  %v3430_v48 = vunpack.i.l.bf16 %v3429_v46 }
 0x2c1   :  { %v3304_v50 = vpack.c.bf16 %v3431_v47, %v3430_v48 }
 0x2c3   :  { %3306 = vmatprep.subr.msk.bf16.mxu1 %vm3842_vm7, %v3304_v50 }
 0x2c4   :  { %3309 = vmatpush3.bf16.xpose.msk.msra.mxu1 %vm3842_vm7, %v3304_v50 }
 0x2cb   :  { %3137 = vmatmul.mubr.msk.f32.vlgmr.msra.gmra.mrb[4].mxu1 %vm316_vm6, %v3824_v41 }
 0x39e   :  { %v3138_v51 = vpop.f32.mrb[4].mxu1 }
 0x39f   :  { %v401_v52 = vmul.f32 0.17677669, %v3138_v51  ;;  %v391_v53 = vpop.f32.mrb[5].mxu1 }
 0x3a0   :  { %v400_v54 = vmul.f32 0.17677669, %v391_v53 }
 0x3a1   :  { %v404_v55 = vsel %vm402_vm8, %v401_v52, -inf }
 0x3a2   :  { %v403_v56 = vsel %vm402_vm8, %v400_v54, -inf }
 0x3a3   :  { %v405_v57 = vmax.f32 %v403_v56, %v404_v55 }
 0x3a5   :  { %v406_v58 = vrot.slane %v405_v57, 4 }
 0x3a7   :  { %v407_v59 = vmax.f32 %v405_v57, %v406_v58 }
 0x3a9   :  { %v408_v60 = vrot.slane %v407_v59, 2 }
 0x3ab   :  { %v409_v61 = vmax.f32 %v407_v59, %v408_v60 }
 0x3ad   :  { %v410_v62 = vrot.slane %v409_v61, 1 }
 0x3af   :  { %v411_v63 = vmax.f32 %v409_v61, %v410_v62 }
 0x3b1   :  { %v412_v0 = vsub.f32 %v400_v54, %v411_v63  ;;  %v413_v1 = vsub.f32 %v401_v52, %v411_v63 }
 0x3b3   :  { %v414_v2 = vmul.f32 1.442695, %v412_v0  ;;  %v416_v3 = vmul.f32 1.442695, %v413_v1  ;;  %v3891_v1 = vld [vmem:[%s4183_s4] sm:$0xff] }
 0x3b4   :  { %3146 = vmatprep.subr.mxu0 %v3891_v1 }
 0x3b5   :  { %3507 = vpow2.f32 %v414_v2  ;;  %3147 = vmatpush3.msra.mxu0 %v3891_v1 }
 0x3b6   :  { %3509 = vpow2.f32 %v416_v3 }
 0x3bf   :  { %v3508_v4 = vpop.eup %3507 }
 0x3c0   :  { %v3510_v5 = vpop.eup %3509  ;;  %v418_v6 = vsel %vm402_vm8, %v3508_v4, 0.0 }
 0x3c1   :  { %v419_v7 = vsel %vm402_vm8, %v3510_v5, 0.0 }
 0x3c2   :  { %v420_v8 = vadd.f32 %v419_v7, %v418_v6 }
 0x3c4   :  { %v421_v9 = vrot.slane %v420_v8, 4 }
 0x3c6   :  { %v422_v10 = vadd.f32 %v421_v9, %v420_v8 }
 0x3c8   :  { %v423_v11 = vrot.slane %v422_v10, 2 }
 0x3ca   :  { %v424_v12 = vadd.f32 %v423_v11, %v422_v10 }
 0x3cc   :  { %v425_v13 = vrot.slane %v424_v12, 1 }
 0x3ce   :  { %v426_v14 = vadd.f32 %v425_v13, %v424_v12 }
 0x3d0   :  { %3511 = vrcp.f32 %v426_v14 }
 0x3da   :  { %v3512_v15 = vpop.eup %3511 }
 0x3db   :  { %v429_v16 = vmul.f32 %v3512_v15, %v3510_v5  ;;  %v428_v17 = vmul.f32 %v3512_v15, %v3508_v4 }
 0x3dd   :  { %v433_v18 = vsel %vm402_vm8, %v429_v16, -inf  ;;  %v430_v19 = vsel %vm402_vm8, %v428_v17, -inf }
 0x3de   :  { %434 = vmax.xlane.f32.xlu0 %v433_v18  ;;  %431 = vmax.xlane.f32.xlu1 %v430_v19 }
 0x3ef   :  { %3438 = vrot.lane.b32.xlu1 %v3832_v43, %s3677_s3 }
 0x46b   :  { %v435_v20 = vpop.xlane.xlu0 %434  ;;  %v432_v23 = vpop.xlane.xlu1 %431 }
 0x46c   :  { %v437_v24 = vsub.f32 %v429_v16, %v435_v20  ;;  %v436_v25 = vsub.f32 %v428_v17, %v432_v23 }
 0x46e   :  { %v440_v26 = vmul.f32 1.442695, %v437_v24  ;;  %v438_v27 = vmul.f32 1.442695, %v436_v25 }
 0x46f   :  { %v3439_v37 = vpop.permute.xlu1 %3438 }
 0x470   :  { %3513 = vpow2.f32 %v440_v26  ;;  %v3441_v46 = vunpack.i.h.bf16 %v3439_v37  ;;  %v3440_v47 = vunpack.i.l.bf16 %v3439_v37 }
 0x471   :  { %3515 = vpow2.f32 %v438_v27 }
 0x472   :  { %v3314_v53 = vpack.c.bf16 %v3441_v46, %v3440_v47 }
 0x47a   :  { %v3514_v28 = vpop.eup %3513 }
 0x47b   :  { %v3516_v29 = vpop.eup %3515  ;;  %v445_v30 = vsel %vm402_vm8, %v3514_v28, 0.0 }
 0x47c   :  { %446 = vadd.xlane.f32.xlu1 %v445_v30  ;;  %v442_v31 = vsel %vm402_vm8, %v3516_v29, 0.0 }
 0x47d   :  { %443 = vadd.xlane.f32.xlu0 %v442_v31 }
 0x48d   :  { %622 = vrot.lane.b32.xlu1 %v3826_v42, %s3678_s6 }
 0x491   :  { %3443 = vrot.lane.b32.xlu1 %v3832_v43, %s3679_s26 }
 0x493   :  { %3433 = vrot.lane.b32.xlu0 %v3832_v43, %s3680_s27 }
 0x495   :  { %936 = vrot.lane.b32.xlu1 %v3824_v41, %s3681_s28 }
 0x497   :  { %624 = vrot.lane.b32.xlu0 %v3824_v41, %s3678_s6 }
 0x49b   :  { %934 = vrot.lane.b32.xlu0 %v3826_v42, %s3681_s28 }
 0x509   :  { %v447_v38 = vpop.xlane.xlu1 %446 }
 0x50a   :  { %v444_v39 = vpop.xlane.xlu0 %443  ;;  %3517 = vrcp.f32 %v447_v38 }
 0x50b   :  { %3519 = vrcp.f32 %v444_v39 }
 0x50d   :  { %v623_v51 = vpop.permute.xlu1 %622 }
 0x50e   :  { %v3434_v40 = vpop.permute.xlu0 %3433 }
 0x50f   :  { %v3436_v48 = vunpack.i.h.bf16 %v3434_v40  ;;  %v3435_v50 = vunpack.i.l.bf16 %v3434_v40 }
 0x511   :  { %v3310_v52 = vpack.c.bf16 %v3436_v48, %v3435_v50  ;;  %v3444_v57 = vpop.permute.xlu1 %3443 }
 0x512   :  { %v3446_v59 = vunpack.i.h.bf16 %v3444_v57  ;;  %v3445_v60 = vunpack.i.l.bf16 %v3444_v57  ;;  %v625_v62 = vpop.permute.xlu0 %624 }
 0x513   :  { %3311 = vmatprep.subr.bf16.mxu1 %v3310_v52 }
 0x514   :  { %v3518_v54 = vpop.eup %3517  ;;  %3313 = vmatpush3.bf16.msra.mxu1 %v3310_v52  ;;  %v3324_v61 = vpack.c.bf16 %v3446_v59, %v3445_v60 }
 0x515   :  { %v3520_v55 = vpop.eup %3519  ;;  %v451_v56 = vmul.f32 %v3518_v54, %v3514_v28  ;;  %3316 = vmatprep.subr.msk.bf16.mxu1 %vm3842_vm7, %v3314_v53  ;;  %v937_v0 = vpop.permute.xlu1 %936 }
 0x516   :  { %v449_v58 = vmul.f32 %v3520_v55, %v3516_v29  ;;  %v935_v63 = vpop.permute.xlu0 %934 }
 0x518   :  { %3143 = vmatprep.mubr.msk.f32.mxu1 %vm402_vm8, %v449_v58 }
 0x519   :  { %3144 = vmatmul.mubr.msk.f32.vlgmr.msra.gmra.mrb[6].mxu1 %vm402_vm8, %v451_v56 }
 0x51a   :  { %3155 = vmatprep.mubr.msk.f32.mxu1 %vm316_vm6, %v623_v51 }
 0x51d   :  { %3319 = vmatpush3.bf16.xpose.msk.msra.mxu1 %vm3842_vm7, %v3314_v53 }
 0x51e   :  { %3326 = vmatprep.subr.msk.bf16.mxu1 %vm3842_vm7, %v3324_v61 }
 0x524   :  { %3156 = vmatmul.mubr.msk.f32.vlgmr.msra.gmra.mrb[8].mxu1 %vm316_vm6, %v625_v62 }
 0x525   :  { %3329 = vmatpush3.bf16.xpose.msk.msra.mxu1 %vm3842_vm7, %v3324_v61  ;;  %3174 = vmatprep.mubr.msk.f32.mxu1 %vm316_vm6, %v935_v63 }
 0x52c   :  { %3175 = vmatmul.mubr.msk.f32.vlgmr.msra.gmra.mrb[10].mxu1 %vm316_vm6, %v937_v0 }
 0x5ec   :  { %v3145_v2 = vpop.f32.mrb[6].mxu1 }
 0x5ed   :  { %v530_v3 = vpop.f32.mrb[7].mxu1 }
 0x5ee   :  { %3148 = vmatprep.mubr.msk.f32.mxu0 %vm316_vm6, %v530_v3 }
 0x5ef   :  { %3149 = vmatmul.mubr.msk.f32.vlgmr.msra.gmra.mrb[4].mxu0 %vm316_vm6, %v3145_v2 }
 0x5f7   :  { %v3157_v4 = vpop.f32.mrb[8].mxu1 }
 0x5f8   :  { %v714_v5 = vmul.f32 0.17677669, %v3157_v4  ;;  %v704_v6 = vpop.f32.mrb[9].mxu1 }
 0x5f9   :  { %v713_v7 = vmul.f32 0.17677669, %v704_v6 }
 0x5fa   :  { %v716_v8 = vsel %vm402_vm8, %v714_v5, -inf }
 0x5fb   :  { %v715_v9 = vsel %vm402_vm8, %v713_v7, -inf }
 0x5fc   :  { %v717_v10 = vmax.f32 %v715_v9, %v716_v8 }
 0x5fe   :  { %v718_v11 = vrot.slane %v717_v10, 4 }
 0x5ff   :  { %v3176_v12 = vpop.f32.mrb[10].mxu1 }
 0x600   :  { %v719_v13 = vmax.f32 %v717_v10, %v718_v11  ;;  %v1026_v14 = vmul.f32 0.17677669, %v3176_v12  ;;  %v1016_v15 = vpop.f32.mrb[11].mxu1 }
 0x601   :  { %v1025_v16 = vmul.f32 0.17677669, %v1016_v15 }
 0x602   :  { %v720_v17 = vrot.slane %v719_v13, 2  ;;  %v1028_v18 = vsel %vm402_vm8, %v1026_v14, -inf }
 0x603   :  { %v1027_v19 = vsel %vm402_vm8, %v1025_v16, -inf }
 0x604   :  { %v721_v20 = vmax.f32 %v719_v13, %v720_v17  ;;  %v1029_v23 = vmax.f32 %v1027_v19, %v1028_v18  ;;  %v285_v19 = vadd.f32 %v3836_v44, %v3820_v36 }
 0x606   :  { %v722_v24 = vrot.slane %v721_v20, 1  ;;  %v1030_v25 = vrot.slane %v1029_v23, 4 }
 0x608   :  { %v723_v26 = vmax.f32 %v721_v20, %v722_v24  ;;  %v1031_v27 = vmax.f32 %v1029_v23, %v1030_v25  ;;  %v280_v20 = vadd.f32 %v3820_v36, %v3838_v45  ;;  %v3923_v23 = vmax.f32 %v285_v19, 0.0 }
 0x60a   :  { %v724_v28 = vsub.f32 %v713_v7, %v723_v26  ;;  %v725_v29 = vsub.f32 %v714_v5, %v723_v26  ;;  %v1032_v30 = vrot.slane %v1031_v27, 2  ;;  %v3925_v24 = vmax.f32 %v280_v20, 0.0 }
 0x60c   :  { %v726_v31 = vmul.f32 1.442695, %v724_v28  ;;  %v728_v37 = vmul.f32 1.442695, %v725_v29  ;;  %v1033_v38 = vmax.f32 %v1031_v27, %v1032_v30 }
 0x60e   :  { %3521 = vpow2.f32 %v726_v31  ;;  %v1034_v39 = vrot.slane %v1033_v38, 1 }
 0x60f   :  { %3523 = vpow2.f32 %v728_v37 }
 0x610   :  { %v1035_v40 = vmax.f32 %v1033_v38, %v1034_v39 }
 0x612   :  { %v1036_v46 = vsub.f32 %v1025_v16, %v1035_v40  ;;  %v1037_v47 = vsub.f32 %v1026_v14, %v1035_v40 }
 0x614   :  { %v1038_v48 = vmul.f32 1.442695, %v1036_v46  ;;  %v1040_v50 = vmul.f32 1.442695, %v1037_v47 }
 0x616   :  { %3525 = vpow2.f32 %v1038_v48 }
 0x617   :  { %3527 = vpow2.f32 %v1040_v50 }
 0x618   :  { %v3522_v51 = vpop.eup %3521 }
 0x619   :  { %v3524_v52 = vpop.eup %3523  ;;  %v730_v53 = vsel %vm402_vm8, %v3522_v51, 0.0 }
 0x61a   :  { %v731_v54 = vsel %vm402_vm8, %v3524_v52, 0.0 }
 0x61b   :  { %v732_v55 = vadd.f32 %v731_v54, %v730_v53 }
 0x61d   :  { %v733_v56 = vrot.slane %v732_v55, 4 }
 0x61f   :  { %v734_v57 = vadd.f32 %v733_v56, %v732_v55 }
 0x620   :  { %v3526_v58 = vpop.eup %3525 }
 0x621   :  { %v3528_v59 = vpop.eup %3527  ;;  %v1042_v60 = vsel %vm402_vm8, %v3526_v58, 0.0  ;;  %v735_v61 = vrot.slane %v734_v57, 2 }
 0x622   :  { %v1043_v62 = vsel %vm402_vm8, %v3528_v59, 0.0 }
 0x623   :  { %v1044_v63 = vadd.f32 %v1043_v62, %v1042_v60  ;;  %v736_v0 = vadd.f32 %v735_v61, %v734_v57 }
 0x625   :  { %v1045_v2 = vrot.slane %v1044_v63, 4  ;;  %v737_v3 = vrot.slane %v736_v0, 1 }
 0x627   :  { %v1046_v4 = vadd.f32 %v1045_v2, %v1044_v63  ;;  %v738_v5 = vadd.f32 %v737_v3, %v736_v0 }
 0x629   :  { %3529 = vrcp.f32 %v738_v5  ;;  %v1047_v6 = vrot.slane %v1046_v4, 2 }
 0x62b   :  { %v1048_v7 = vadd.f32 %v1047_v6, %v1046_v4 }
 0x62d   :  { %v1049_v8 = vrot.slane %v1048_v7, 1 }
 0x62f   :  { %v1050_v9 = vadd.f32 %v1049_v8, %v1048_v7 }
 0x631   :  { %3531 = vrcp.f32 %v1050_v9 }
 0x633   :  { %v3530_v10 = vpop.eup %3529 }
 0x634   :  { %v741_v11 = vmul.f32 %v3530_v10, %v3524_v52  ;;  %v740_v12 = vmul.f32 %v3530_v10, %v3522_v51  ;;  %v3962_v10 = vld [vmem:[%s4183_s4 + $0x8] sm:$0xff] }
 0x636   :  { %v745_v13 = vsel %vm402_vm8, %v741_v11, -inf  ;;  %v742_v14 = vsel %vm402_vm8, %v740_v12, -inf }
 0x637   :  { %746 = vmax.xlane.f32.xlu1 %v745_v13  ;;  %743 = vmax.xlane.f32.xlu0 %v742_v14 }
 0x63b   :  { %v3532_v15 = vpop.eup %3531 }
 0x63c   :  { %v3907_v16 = vmul.f32 %v3532_v15, %v3528_v59  ;;  %v3909_v17 = vmul.f32 %v3532_v15, %v3526_v58 }
 0x63e   :  { %v1057_v18 = vsel %vm402_vm8, %v3907_v16, -inf  ;;  %v1054_v57 = vsel %vm402_vm8, %v3909_v17, -inf }
 0x648   :  { %3448 = vrot.lane.b32.xlu1 %v3832_v43, %s3682_s9 }
 0x64c   :  { %1248 = vrot.lane.b32.xlu1 %v3824_v41, %s3683_s10  ;;  %v3929_v41 = vpack.i.bf16 %v3923_v23, %v3925_v24 }
 0x650   :  { %3453 = vrot.lane.b32.xlu1 %v3832_v43, %s3684_s11 }
 0x674   :  { %1058 = vmax.xlane.f32.xlu1 %v1057_v18 }
 0x685   :  { %3458 = vrot.lane.b32.xlu1 %v3929_v41, %s3676_s2  ;;  %s3645_s2 = scalar_lea.vmem %s2903_s1, 32 }
 0x686   :  { %p3646_p8 = scmp.ne.s32.totalorder %s2903_s1, %s3645_s2  ;;  %p3651_p10 = scmp.lt.s32.totalorder %s3645_s2, %s3645_s2 }
 0x688   :  { %p3652_p11 = por %p3651_p10, %p3650_p9 }
 0x68a   :  { %p3653_p12 = pnand %p3652_p11, %p3646_p8 }
 0x6c4   :  { %v747_v25 = vpop.xlane.xlu1 %746  ;;  %v744_v26 = vpop.xlane.xlu0 %743 }
 0x6c5   :  { %v749_v27 = vsub.f32 %v741_v11, %v747_v25  ;;  %v748_v28 = vsub.f32 %v740_v12, %v744_v26 }
 0x6c7   :  { %v750_v29 = vmul.f32 1.442695, %v748_v28  ;;  %v752_v44 = vmul.f32 1.442695, %v749_v27 }
 0x6c8   :  { %v3449_v30 = vpop.permute.xlu1 %3448 }
 0x6c9   :  { %v3451_v31 = vunpack.i.h.bf16 %v3449_v30  ;;  %v3450_v36 = vunpack.i.l.bf16 %v3449_v30  ;;  %3533 = vpow2.f32 %v750_v29 }
 0x6ca   :  { %3535 = vpow2.f32 %v752_v44 }
 0x6cb   :  { %v3334_v45 = vpack.c.bf16 %v3451_v31, %v3450_v36 }
 0x6cc   :  { %v1249_v37 = vpop.permute.xlu1 %1248 }
 0x6cd   :  { %3336 = vmatprep.subr.msk.bf16.mxu1 %vm3842_vm7, %v3334_v45 }
 0x6ce   :  { %3339 = vmatpush3.bf16.xpose.msk.msra.mxu1 %vm3842_vm7, %v3334_v45 }
 0x6d0   :  { %v3454_v38 = vpop.permute.xlu1 %3453 }
 0x6d1   :  { %v3456_v39 = vunpack.i.h.bf16 %v3454_v38  ;;  %v3455_v40 = vunpack.i.l.bf16 %v3454_v38 }
 0x6d3   :  { %v3320_v46 = vpack.c.bf16 %v3456_v39, %v3455_v40  ;;  %v3534_v47 = vpop.eup %3533 }
 0x6d4   :  { %v754_v48 = vsel %vm402_vm8, %v3534_v47, 0.0  ;;  %v3536_v50 = vpop.eup %3535 }
 0x6d5   :  { %3321 = vmatprep.subr.bf16.mxu0 %v3320_v46  ;;  %755 = vadd.xlane.f32.xlu0 %v754_v48  ;;  %v757_v51 = vsel %vm402_vm8, %v3536_v50, 0.0 }
 0x6d6   :  { %3323 = vmatpush3.bf16.msra.mxu0 %v3320_v46 }
 0x6d7   :  { %3165 = vmatprep.subr.mxu0 %v3962_v10 }
 0x6d9   :  { %758 = vadd.xlane.f32.xlu0 %v757_v51 }
 0x6ef   :  { %1246 = vrot.lane.b32.xlu0 %v3826_v42, %s3683_s10 }
 0x701   :  { %v1059_v52 = vpop.xlane.xlu1 %1058 }
 0x702   :  { %v1061_v0 = vsub.f32 %v3907_v16, %v1059_v52 }
 0x704   :  { %v1064_v4 = vmul.f32 1.442695, %v1061_v0 }
 0x705   :  { %v3459_v53 = vpop.permute.xlu1 %3458 }
 0x706   :  { %v3461_v54 = vunpack.i.h.bf16 %v3459_v53  ;;  %v3460_v55 = vunpack.i.l.bf16 %v3459_v53 }
 0x708   :  { %v3344_v56 = vpack.c.bf16 %v3461_v54, %v3460_v55 }
 0x70a   :  { %3346 = vmatprep.subr.msk.bf16.mxu1 %vm3842_vm7, %v3344_v56 }
 0x70e   :  { %1055 = vmax.xlane.f32.xlu0 %v1054_v57 }
 0x762   :  { %v756_v58 = vpop.xlane.xlu0 %755 }
 0x763   :  { %3537 = vrcp.f32 %v756_v58 }
 0x766   :  { %v759_v59 = vpop.xlane.xlu0 %758 }
 0x767   :  { %3539 = vrcp.f32 %v759_v59 }
 0x76a   :  { %v1247_v60 = vpop.permute.xlu0 %1246 }
 0x76b   :  { %3193 = vmatprep.mubr.msk.f32.mxu1 %vm316_vm6, %v1247_v60 }
 0x76c   :  { %3194 = vmatmul.mubr.msk.f32.vlgmr.msra.gmra.mrb[12].mxu1 %vm316_vm6, %v1249_v37 }
 0x76d   :  { %v3538_v42 = vpop.eup %3537  ;;  %3349 = vmatpush3.bf16.xpose.msk.msra.mxu1 %vm3842_vm7, %v3344_v56  ;;  %3212 = vmatprep.mubr.msk.f32.mxu1 %vm316_vm6, %v3925_v24 }
 0x76e   :  { %v761_v61 = vmul.f32 %v3538_v42, %v3534_v47 }
 0x770   :  { %3162 = vmatprep.mubr.msk.f32.mxu0 %vm402_vm8, %v761_v61 }
 0x771   :  { %v3540_v62 = vpop.eup %3539 }
 0x772   :  { %v763_v63 = vmul.f32 %v3540_v62, %v3536_v50 }
 0x774   :  { %3213 = vmatmul.mubr.msk.f32.vlgmr.msra.gmra.mrb[14].mxu1 %vm316_vm6, %v3923_v23  ;;  %3163 = vmatmul.mubr.msk.f32.vlgmr.msra.gmra.mrb[6].mxu0 %vm402_vm8, %v763_v63 }
 0x775   :  { %3166 = vmatpush3.msra.mxu0 %v3962_v10 }
 0x79b   :  { %v1056_v2 = vpop.xlane.xlu0 %1055 }
 0x79c   :  { %v1060_v3 = vsub.f32 %v3909_v17, %v1056_v2 }
 0x79e   :  { %v1062_v5 = vmul.f32 1.442695, %v1060_v3 }
 0x7a0   :  { %3541 = vpow2.f32 %v1062_v5 }
 0x7a1   :  { %3543 = vpow2.f32 %v1064_v4 }
 0x7aa   :  { %v3542_v6 = vpop.eup %3541 }
 0x7ab   :  { %v1066_v7 = vsel %vm402_vm8, %v3542_v6, 0.0  ;;  %v3544_v8 = vpop.eup %3543 }
 0x7ac   :  { %1067 = vadd.xlane.f32.xlu0 %v1066_v7  ;;  %v1069_v9 = vsel %vm402_vm8, %v3544_v8, 0.0 }
 0x7b0   :  { %1070 = vadd.xlane.f32.xlu0 %v1069_v9 }
 0x7c6   :  { %3463 = vrot.lane.b32.xlu0 %v3832_v43, %s3685_s14 }
 0x839   :  { %v1068_v11 = vpop.xlane.xlu0 %1067 }
 0x83a   :  { %3545 = vrcp.f32 %v1068_v11 }
 0x83d   :  { %v1071_v12 = vpop.xlane.xlu0 %1070 }
 0x83e   :  { %3547 = vrcp.f32 %v1071_v12 }
 0x83f   :  { %v3195_v13 = vpop.f32.mrb[12].mxu1 }
 0x840   :  { %v1338_v14 = vmul.f32 0.17677669, %v3195_v13  ;;  %v1328_v15 = vpop.f32.mrb[13].mxu1 }
 0x841   :  { %v1337_v16 = vmul.f32 0.17677669, %v1328_v15  ;;  %v3464_v17 = vpop.permute.xlu0 %3463 }
 0x842   :  { %v1340_v18 = vsel %vm402_vm8, %v1338_v14, -inf  ;;  %v3466_v19 = vunpack.i.h.bf16 %v3464_v17  ;;  %v3465_v20 = vunpack.i.l.bf16 %v3464_v17 }
 0x843   :  { %v1339_v25 = vsel %vm402_vm8, %v1337_v16, -inf }
 0x844   :  { %v1341_v26 = vmax.f32 %v1339_v25, %v1340_v18  ;;  %v3330_v27 = vpack.c.bf16 %v3466_v19, %v3465_v20  ;;  %v3546_v28 = vpop.eup %3545 }
 0x845   :  { %v1073_v40 = vmul.f32 %v3546_v28, %v3542_v6 }
 0x846   :  { %v1342_v29 = vrot.slane %v1341_v26, 4  ;;  %3331 = vmatprep.subr.bf16.mxu0 %v3330_v27 }
 0x847   :  { %v3214_v44 = vpop.f32.mrb[14].mxu1  ;;  %v3164_v30 = vpop.f32.mrb[6].mxu0 }
 0x848   :  { %v1343_v31 = vmax.f32 %v1341_v26, %v1342_v29  ;;  %v1687_v36 = vmul.f32 0.17677669, %v3214_v44  ;;  %v1677_v45 = vpop.f32.mrb[15].mxu1  ;;  %v842_v37 = vpop.f32.mrb[7].mxu0 }
 0x849   :  { %v3548_v38 = vpop.eup %3547  ;;  %v1686_v39 = vmul.f32 0.17677669, %v1677_v45  ;;  %3167 = vmatprep.mubr.msk.f32.mxu0 %vm316_vm6, %v842_v37 }
 0x84a   :  { %v1344_v46 = vrot.slane %v1343_v31, 2  ;;  %v1689_v47 = vsel %vm402_vm8, %v1687_v36, -inf  ;;  %3168 = vmatmul.mubr.msk.f32.vlgmr.msra.gmra.mrb[4].mxu0 %vm316_vm6, %v3164_v30  ;;  %v1075_v50 = vmul.f32 %v3548_v38, %v3544_v8 }
 0x84b   :  { %v1688_v48 = vsel %vm402_vm8, %v1686_v39, -inf  ;;  %3333 = vmatpush3.bf16.msra.mxu0 %v3330_v27  ;;  %3181 = vmatprep.mubr.msk.f32.mxu0 %vm402_vm8, %v1073_v40 }
 0x84c   :  { %v1345_v51 = vmax.f32 %v1343_v31, %v1344_v46  ;;  %v1690_v52 = vmax.f32 %v1688_v48, %v1689_v47  ;;  %v3991_v47 = vld [vmem:[%s4183_s4 + $0x10] sm:$0xff] }
 0x84d   :  { %3184 = vmatprep.subr.mxu0 %v3991_v47 }
 0x84e   :  { %v1346_v53 = vrot.slane %v1345_v51, 1  ;;  %v1691_v54 = vrot.slane %v1690_v52, 4  ;;  %3182 = vmatmul.mubr.msk.f32.vlgmr.msra.gmra.mrb[8].mxu0 %vm402_vm8, %v1075_v50 }
 0x84f   :  { %3185 = vmatpush3.msra.mxu0 %v3991_v47 }
 0x850   :  { %v1347_v55 = vmax.f32 %v1345_v51, %v1346_v53  ;;  %v1692_v56 = vmax.f32 %v1690_v52, %v1691_v54 }
 0x852   :  { %v1348_v57 = vsub.f32 %v1337_v16, %v1347_v55  ;;  %v1349_v58 = vsub.f32 %v1338_v14, %v1347_v55  ;;  %v1693_v59 = vrot.slane %v1692_v56, 2 }
 0x854   :  { %v1350_v60 = vmul.f32 1.442695, %v1348_v57  ;;  %v1352_v42 = vmul.f32 1.442695, %v1349_v58  ;;  %v1694_v61 = vmax.f32 %v1692_v56, %v1693_v59 }
 0x856   :  { %3549 = vpow2.f32 %v1350_v60  ;;  %v1695_v62 = vrot.slane %v1694_v61, 1 }
 0x857   :  { %3551 = vpow2.f32 %v1352_v42 }
 0x858   :  { %v1696_v63 = vmax.f32 %v1694_v61, %v1695_v62 }
 0x85a   :  { %v1697_v0 = vsub.f32 %v1686_v39, %v1696_v63  ;;  %v1698_v2 = vsub.f32 %v1687_v36, %v1696_v63 }
 0x85c   :  { %v1699_v3 = vmul.f32 1.442695, %v1697_v0  ;;  %v1701_v4 = vmul.f32 1.442695, %v1698_v2 }
 0x85e   :  { %3553 = vpow2.f32 %v1699_v3 }
 0x85f   :  { %3555 = vpow2.f32 %v1701_v4 }
 0x860   :  { %v3550_v5 = vpop.eup %3549 }
 0x861   :  { %v3552_v6 = vpop.eup %3551  ;;  %v1354_v7 = vsel %vm402_vm8, %v3550_v5, 0.0 }
 0x862   :  { %v1355_v8 = vsel %vm402_vm8, %v3552_v6, 0.0 }
 0x863   :  { %v1356_v9 = vadd.f32 %v1355_v8, %v1354_v7 }
 0x865   :  { %v1357_v11 = vrot.slane %v1356_v9, 4 }
 0x867   :  { %v1358_v12 = vadd.f32 %v1357_v11, %v1356_v9 }
 0x868   :  { %v3554_v13 = vpop.eup %3553 }
 0x869   :  { %v3556_v14 = vpop.eup %3555  ;;  %v1703_v15 = vsel %vm402_vm8, %v3554_v13, 0.0  ;;  %v1359_v16 = vrot.slane %v1358_v12, 2 }
 0x86a   :  { %v1704_v17 = vsel %vm402_vm8, %v3556_v14, 0.0 }
 0x86b   :  { %v1705_v18 = vadd.f32 %v1704_v17, %v1703_v15  ;;  %v1360_v19 = vadd.f32 %v1359_v16, %v1358_v12 }
 0x86d   :  { %v1706_v20 = vrot.slane %v1705_v18, 4  ;;  %v1361_v25 = vrot.slane %v1360_v19, 1 }
 0x86f   :  { %v1707_v26 = vadd.f32 %v1706_v20, %v1705_v18  ;;  %v1362_v27 = vadd.f32 %v1361_v25, %v1360_v19 }
 0x871   :  { %3557 = vrcp.f32 %v1362_v27  ;;  %v1708_v28 = vrot.slane %v1707_v26, 2 }
 0x873   :  { %v1709_v29 = vadd.f32 %v1708_v28, %v1707_v26 }
 0x875   :  { %v1710_v44 = vrot.slane %v1709_v29, 1 }
 0x877   :  { %v1711_v30 = vadd.f32 %v1710_v44, %v1709_v29 }
 0x879   :  { %3559 = vrcp.f32 %v1711_v30 }
 0x87b   :  { %v3558_v31 = vpop.eup %3557 }
 0x87c   :  { %v1365_v36 = vmul.f32 %v3558_v31, %v3552_v6  ;;  %v1364_v45 = vmul.f32 %v3558_v31, %v3550_v5 }
 0x87e   :  { %v1369_v37 = vsel %vm402_vm8, %v1365_v36, -inf  ;;  %v1366_v38 = vsel %vm402_vm8, %v1364_v45, -inf }
 0x87f   :  { %1370 = vmax.xlane.f32.xlu0 %v1369_v37  ;;  %1367 = vmax.xlane.f32.xlu1 %v1366_v38 }
 0x883   :  { %v3560_v39 = vpop.eup %3559 }
 0x884   :  { %v3982_v40 = vmul.f32 %v3560_v39, %v3554_v13  ;;  %v3984_v46 = vmul.f32 %v3560_v39, %v3556_v14  ;;  %v4024_v14 = vld [vmem:[%s4183_s4 + $0x18] sm:$0xff] }
 0x886   :  { %v1715_v0 = vsel %vm402_vm8, %v3982_v40, -inf  ;;  %v1718_v2 = vsel %vm402_vm8, %v3984_v46, -inf }
 0x890   :  { %3468 = vrot.lane.b32.xlu1 %v3929_v41, %s3677_s3 }
 0x90c   :  { %v1371_v48 = vpop.xlane.xlu0 %1370  ;;  %v1368_v50 = vpop.xlane.xlu1 %1367 }
 0x90d   :  { %v1373_v51 = vsub.f32 %v1365_v36, %v1371_v48  ;;  %v1372_v52 = vsub.f32 %v1364_v45, %v1368_v50 }
 0x90f   :  { %v1376_v53 = vmul.f32 1.442695, %v1373_v51  ;;  %v1374_v54 = vmul.f32 1.442695, %v1372_v52 }
 0x910   :  { %v3469_v55 = vpop.permute.xlu1 %3468 }
 0x911   :  { %3561 = vpow2.f32 %v1376_v53  ;;  %v3471_v56 = vunpack.i.h.bf16 %v3469_v55  ;;  %v3470_v57 = vunpack.i.l.bf16 %v3469_v55 }
 0x912   :  { %3563 = vpow2.f32 %v1374_v54 }
 0x913   :  { %v3354_v58 = vpack.c.bf16 %v3471_v56, %v3470_v57 }
 0x915   :  { %3356 = vmatprep.subr.msk.bf16.mxu1 %vm3842_vm7, %v3354_v58 }
 0x916   :  { %3359 = vmatpush3.bf16.xpose.msk.msra.mxu1 %vm3842_vm7, %v3354_v58 }
 0x91b   :  { %v3562_v59 = vpop.eup %3561 }
 0x91c   :  { %v3564_v60 = vpop.eup %3563  ;;  %v1381_v42 = vsel %vm402_vm8, %v3562_v59, 0.0 }
 0x91d   :  { %1382 = vadd.xlane.f32.xlu0 %v1381_v42  ;;  %v1378_v61 = vsel %vm402_vm8, %v3564_v60, 0.0 }
 0x91e   :  { %1379 = vadd.xlane.f32.xlu1 %v1378_v61 }
 0x921   :  { %v3183_v62 = vpop.f32.mrb[8].mxu0 }
 0x922   :  { %v1154_v63 = vpop.f32.mrb[9].mxu0 }
 0x923   :  { %3186 = vmatprep.mubr.msk.f32.mxu0 %vm316_vm6, %v1154_v63 }
 0x924   :  { %3187 = vmatmul.mubr.msk.f32.vlgmr.msra.gmra.mrb[4].mxu0 %vm316_vm6, %v3183_v62 }
 0x92f   :  { %1909 = vrot.lane.b32.xlu1 %v3923_v23, %s3678_s6 }
 0x933   :  { %3473 = vrot.lane.b32.xlu1 %v3832_v43, %s3686_s17  ;;  %1907 = vrot.lane.b32.xlu0 %v3925_v24, %s3678_s6 }
 0x952   :  { %1716 = vmax.xlane.f32.xlu0 %v1715_v0 }
 0x957   :  { %1719 = vmax.xlane.f32.xlu1 %v1718_v2 }
 0x968   :  { %3478 = vrot.lane.b32.xlu1 %v3929_v41, %s3679_s26 }
 0x96c   :  { %2221 = vrot.lane.b32.xlu1 %v3923_v23, %s3681_s28 }
 0x970   :  { %3483 = vrot.lane.b32.xlu1 %v3929_v41, %s3680_s27 }
 0x9aa   :  { %v1383_v43 = vpop.xlane.xlu0 %1382 }
 0x9ab   :  { %v1380_v3 = vpop.xlane.xlu1 %1379 }
 0x9ac   :  { %3565 = vrcp.f32 %v1380_v3 }
 0x9ad   :  { %3567 = vrcp.f32 %v1383_v43 }
 0x9ae   :  { %v1908_v4 = vpop.permute.xlu0 %1907 }
 0x9af   :  { %v1910_v5 = vpop.permute.xlu1 %1909  ;;  %3231 = vmatprep.mubr.msk.f32.mxu1 %vm316_vm6, %v1908_v4 }
 0x9b0   :  { %3232 = vmatmul.mubr.msk.f32.vlgmr.msra.gmra.mrb[16].mxu1 %vm316_vm6, %v1910_v5 }
 0x9b3   :  { %v3474_v6 = vpop.permute.xlu1 %3473 }
 0x9b4   :  { %v3476_v7 = vunpack.i.h.bf16 %v3474_v6  ;;  %v3475_v8 = vunpack.i.l.bf16 %v3474_v6 }
 0x9b6   :  { %v3566_v9 = vpop.eup %3565  ;;  %v3340_v11 = vpack.c.bf16 %v3476_v7, %v3475_v8 }
 0x9b7   :  { %v3568_v12 = vpop.eup %3567  ;;  %v1385_v13 = vmul.f32 %v3566_v9, %v3564_v60 }
 0x9b8   :  { %3341 = vmatprep.subr.bf16.mxu0 %v3340_v11  ;;  %v1387_v15 = vmul.f32 %v3568_v12, %v3562_v59 }
 0x9b9   :  { %3343 = vmatpush3.bf16.msra.mxu0 %v3340_v11  ;;  %3200 = vmatprep.mubr.msk.f32.mxu0 %vm402_vm8, %v1385_v13 }
 0x9ba   :  { %3203 = vmatprep.subr.mxu0 %v4024_v14 }
 0x9bc   :  { %3201 = vmatmul.mubr.msk.f32.vlgmr.msra.gmra.mrb[10].mxu0 %vm402_vm8, %v1387_v15 }
 0x9bd   :  { %3204 = vmatpush3.msra.mxu0 %v4024_v14 }
 0x9df   :  { %v1717_v16 = vpop.xlane.xlu0 %1716 }
 0x9e0   :  { %v1721_v17 = vsub.f32 %v3982_v40, %v1717_v16 }
 0x9e2   :  { %v1723_v18 = vmul.f32 1.442695, %v1721_v17 }
 0x9e4   :  { %3569 = vpow2.f32 %v1723_v18  ;;  %v1720_v19 = vpop.xlane.xlu1 %1719 }
 0x9e5   :  { %v1722_v20 = vsub.f32 %v3984_v46, %v1720_v19 }
 0x9e7   :  { %v1725_v25 = vmul.f32 1.442695, %v1722_v20 }
 0x9e8   :  { %v3479_v26 = vpop.permute.xlu1 %3478 }
 0x9e9   :  { %3571 = vpow2.f32 %v1725_v25  ;;  %v3481_v27 = vunpack.i.h.bf16 %v3479_v26  ;;  %v3480_v28 = vunpack.i.l.bf16 %v3479_v26 }
 0x9eb   :  { %v3364_v29 = vpack.c.bf16 %v3481_v27, %v3480_v28 }
 0x9ec   :  { %v2222_v44 = vpop.permute.xlu1 %2221 }
 0x9ed   :  { %3366 = vmatprep.subr.msk.bf16.mxu1 %vm3842_vm7, %v3364_v29 }
 0x9ee   :  { %v3570_v30 = vpop.eup %3569  ;;  %3369 = vmatpush3.bf16.xpose.msk.msra.mxu1 %vm3842_vm7, %v3364_v29 }
 0x9ef   :  { %v1727_v31 = vsel %vm402_vm8, %v3570_v30, 0.0 }
 0x9f0   :  { %v3484_v36 = vpop.permute.xlu1 %3483  ;;  %1728 = vadd.xlane.f32.xlu0 %v1727_v31 }
 0x9f1   :  { %v3486_v45 = vunpack.i.h.bf16 %v3484_v36  ;;  %v3485_v37 = vunpack.i.l.bf16 %v3484_v36 }
 0x9f3   :  { %v3572_v38 = vpop.eup %3571  ;;  %v3350_v39 = vpack.c.bf16 %v3486_v45, %v3485_v37 }
 0x9f4   :  { %v1730_v40 = vsel %vm402_vm8, %v3572_v38, 0.0 }
 0x9f5   :  { %3351 = vmatprep.subr.bf16.mxu0 %v3350_v39  ;;  %1731 = vadd.xlane.f32.xlu0 %v1730_v40 }
 0xa0b   :  { %2219 = vrot.lane.b32.xlu0 %v3925_v24, %s3681_s28 }
 0xa7d   :  { %v1729_v46 = vpop.xlane.xlu0 %1728 }
 0xa7e   :  { %3573 = vrcp.f32 %v1729_v46 }
 0xa82   :  { %v1732_v48 = vpop.xlane.xlu0 %1731 }
 0xa83   :  { %v3233_v50 = vpop.f32.mrb[16].mxu1  ;;  %3575 = vrcp.f32 %v1732_v48 }
 0xa84   :  { %v1999_v51 = vmul.f32 0.17677669, %v3233_v50  ;;  %v1989_v52 = vpop.f32.mrb[17].mxu1 }
 0xa85   :  { %v1998_v53 = vmul.f32 0.17677669, %v1989_v52 }
 0xa86   :  { %v2001_v54 = vsel %vm402_vm8, %v1999_v51, -inf  ;;  %v2220_v55 = vpop.permute.xlu0 %2219 }
 0xa87   :  { %v2000_v56 = vsel %vm402_vm8, %v1998_v53, -inf  ;;  %3250 = vmatprep.mubr.msk.f32.mxu1 %vm316_vm6, %v2220_v55 }
 0xa88   :  { %v2002_v57 = vmax.f32 %v2000_v56, %v2001_v54  ;;  %3251 = vmatmul.mubr.msk.f32.vlgmr.msra.gmra.mrb[18].mxu1 %vm316_vm6, %v2222_v44  ;;  %v3574_v60 = vpop.eup %3573 }
 0xa89   :  { %v1734_v2 = vmul.f32 %v3574_v60, %v3570_v30 }
 0xa8a   :  { %v2003_v58 = vrot.slane %v2002_v57, 4 }
 0xa8c   :  { %v2004_v59 = vmax.f32 %v2002_v57, %v2003_v58 }
 0xa8d   :  { %v3576_v0 = vpop.eup %3575 }
 0xa8e   :  { %v2005_v42 = vrot.slane %v2004_v59, 2  ;;  %v1736_v3 = vmul.f32 %v3576_v0, %v3572_v38 }
 0xa8f   :  { %v3202_v61 = vpop.f32.mrb[10].mxu0 }
 0xa90   :  { %v2006_v62 = vmax.f32 %v2004_v59, %v2005_v42  ;;  %v1466_v63 = vpop.f32.mrb[11].mxu0 }
 0xa91   :  { %3205 = vmatprep.mubr.msk.f32.mxu0 %vm316_vm6, %v1466_v63 }
 0xa92   :  { %v2007_v43 = vrot.slane %v2006_v62, 1  ;;  %3206 = vmatmul.mubr.msk.f32.vlgmr.msra.gmra.mrb[4].mxu0 %vm316_vm6, %v3202_v61 }
 0xa93   :  { %3353 = vmatpush3.bf16.msra.mxu0 %v3350_v39  ;;  %3219 = vmatprep.mubr.msk.f32.mxu0 %vm402_vm8, %v1734_v2 }
 0xa94   :  { %v2008_v4 = vmax.f32 %v2006_v62, %v2007_v43  ;;  %3222 = vmatprep.subr.mxu0 %v3891_v1  ;;  %v4077_v62 = vld [vmem:[%s4184_s5] ss:$0 sm:$0xff] }
 0xa96   :  { %v2009_v5 = vsub.f32 %v1998_v53, %v2008_v4  ;;  %v2010_v6 = vsub.f32 %v1999_v51, %v2008_v4  ;;  %3220 = vmatmul.mubr.msk.f32.vlgmr.msra.gmra.mrb[12].mxu0 %vm402_vm8, %v1736_v3 }
 0xa97   :  { %3223 = vmatpush3.msra.mxu0 %v3891_v1 }
 0xa98   :  { %v2011_v7 = vmul.f32 1.442695, %v2009_v5  ;;  %v2013_v8 = vmul.f32 1.442695, %v2010_v6  ;;  %v4083_v6 = vld [vmem:[#allocation2 + $0x18] sm:$0xff] }
 0xa9a   :  { %3577 = vpow2.f32 %v2011_v7  ;;  %v4085_v7 = vld [vmem:[#allocation2 + $0x8] sm:$0xff] }
 0xa9b   :  { %3579 = vpow2.f32 %v2013_v8 }
 0xaa4   :  { %v3578_v9 = vpop.eup %3577 }
 0xaa5   :  { %v3580_v11 = vpop.eup %3579  ;;  %v2015_v12 = vsel %vm402_vm8, %v3578_v9, 0.0 }
 0xaa6   :  { %v2016_v13 = vsel %vm402_vm8, %v3580_v11, 0.0 }
 0xaa7   :  { %v2017_v15 = vadd.f32 %v2016_v13, %v2015_v12  ;;  %v4090_v12 = vld [vmem:[#allocation2] sm:$0xff] }
 0xaa9   :  { %v2018_v16 = vrot.slane %v2017_v15, 4 }
 0xaab   :  { %v2019_v17 = vadd.f32 %v2018_v16, %v2017_v15 }
 0xaad   :  { %v2020_v18 = vrot.slane %v2019_v17, 2 }
 0xaaf   :  { %v2021_v19 = vadd.f32 %v2020_v18, %v2019_v17 }
 0xab1   :  { %v2022_v20 = vrot.slane %v2021_v19, 1 }
 0xab3   :  { %v2023_v25 = vadd.f32 %v2022_v20, %v2021_v19 }
 0xab5   :  { %3581 = vrcp.f32 %v2023_v25 }
 0xabf   :  { %v3582_v26 = vpop.eup %3581 }
 0xac0   :  { %v2026_v1 = vmul.f32 %v3582_v26, %v3580_v11  ;;  %v2025_v27 = vmul.f32 %v3582_v26, %v3578_v9  ;;  %v4088_v11 = vld [vmem:[#allocation2 + $0x10] sm:$0xff] }
 0xac2   :  { %v2030_v28 = vsel %vm402_vm8, %v2026_v1, -inf  ;;  %v2027_v29 = vsel %vm402_vm8, %v2025_v27, -inf }
 0xac3   :  { %2031 = vmax.xlane.f32.xlu1 %v2030_v28  ;;  %2028 = vmax.xlane.f32.xlu0 %v2027_v29 }
 0xad4   :  { %3488 = vrot.lane.b32.xlu1 %v3929_v41, %s3682_s9 }
 0xad8   :  { %2533 = vrot.lane.b32.xlu1 %v3923_v23, %s3683_s10 }
 0xadc   :  { %3493 = vrot.lane.b32.xlu1 %v3929_v41, %s3684_s11 }
 0xb50   :  { %v2032_v44 = vpop.xlane.xlu1 %2031  ;;  %v2029_v30 = vpop.xlane.xlu0 %2028 }
 0xb51   :  { %v2034_v31 = vsub.f32 %v2026_v1, %v2032_v44  ;;  %v2033_v36 = vsub.f32 %v2025_v27, %v2029_v30 }
 0xb53   :  { %v2035_v45 = vmul.f32 1.442695, %v2033_v36  ;;  %v2037_v37 = vmul.f32 1.442695, %v2034_v31 }
 0xb54   :  { %v3489_v38 = vpop.permute.xlu1 %3488 }
 0xb55   :  { %v3491_v39 = vunpack.i.h.bf16 %v3489_v38  ;;  %v3490_v40 = vunpack.i.l.bf16 %v3489_v38  ;;  %3583 = vpow2.f32 %v2035_v45 }
 0xb56   :  { %3585 = vpow2.f32 %v2037_v37 }
 0xb57   :  { %v3374_v46 = vpack.c.bf16 %v3491_v39, %v3490_v40 }
 0xb58   :  { %v4060_v48 = vpop.permute.xlu1 %2533 }
 0xb59   :  { %3376 = vmatprep.subr.msk.bf16.mxu1 %vm3842_vm7, %v3374_v46 }
 0xb5a   :  { %3379 = vmatpush3.bf16.xpose.msk.msra.mxu1 %vm3842_vm7, %v3374_v46 }
 0xb5b   :  { %v3252_v23 = vpop.f32.mrb[18].mxu1 }
 0xb5c   :  { %v2311_v50 = vmul.f32 0.17677669, %v3252_v23  ;;  %v3494_v51 = vpop.permute.xlu1 %3493  ;;  %v2301_v52 = vpop.f32.mrb[19].mxu1 }
 0xb5d   :  { %v3496_v53 = vunpack.i.h.bf16 %v3494_v51  ;;  %v3495_v54 = vunpack.i.l.bf16 %v3494_v51  ;;  %v2310_v55 = vmul.f32 0.17677669, %v2301_v52 }
 0xb5e   :  { %v2313_v56 = vsel %vm402_vm8, %v2311_v50, -inf }
 0xb5f   :  { %v3360_v57 = vpack.c.bf16 %v3496_v53, %v3495_v54  ;;  %v2312_v58 = vsel %vm402_vm8, %v2310_v55, -inf  ;;  %v4068_v59 = vpop.eup %3583 }
 0xb60   :  { %v2314_v60 = vmax.f32 %v2312_v58, %v2313_v56  ;;  %v2039_v49 = vsel %vm402_vm8, %v4068_v59, 0.0  ;;  %v4072_v42 = vpop.eup %3585 }
 0xb61   :  { %3361 = vmatprep.subr.bf16.mxu0 %v3360_v57  ;;  %2040 = vadd.xlane.f32.xlu0 %v2039_v49  ;;  %v2042_v2 = vsel %vm402_vm8, %v4072_v42, 0.0 }
 0xb62   :  { %v2315_v61 = vrot.slane %v2314_v60, 4 }
 0xb64   :  { %v2316_v63 = vmax.f32 %v2314_v60, %v2315_v61 }
 0xb65   :  { %v3207_v0 = vpop.f32.mrb[4].mxu0  ;;  %2043 = vadd.xlane.f32.xlu0 %v2042_v2 }
 0xb66   :  { %v2317_v43 = vrot.slane %v2316_v63, 2  ;;  %v3384_v3 = vadd.f32 %v3207_v0, %v4077_v62  ;;  %v1547_v4 = vpop.f32.mrb[5].mxu0 }
 0xb67   :  { %v3385_v5 = vadd.f32 %v4077_v62, %v1547_v4 }
 0xb68   :  { %v2318_v8 = vmax.f32 %v2316_v63, %v2317_v43  ;;  %v1559_v9 = vadd.f32 %v3384_v3, %v3801_v32 }
 0xb69   :  { %v1558_v13 = vadd.f32 %v3385_v5, %v3803_v33  ;;  %v3221_v15 = vpop.f32.mrb[12].mxu0 }
 0xb6a   :  { %v2319_v16 = vrot.slane %v2318_v8, 1  ;;  %v1815_v17 = vpop.f32.mrb[13].mxu0  ;;  %v1580_v18 = vmul.f32 %v1559_v9, %v4083_v6  ;;  %v1561_v19 = vmul.f32 %v1559_v9, %v4085_v7 }
 0xb6b   :  { %3224 = vmatprep.mubr.msk.f32.mxu0 %vm316_vm6, %v1815_v17  ;;  %v1579_v20 = vmul.f32 %v1558_v13, %v4088_v11  ;;  %v1560_v25 = vmul.f32 %v1558_v13, %v4090_v12 }
 0xb6c   :  { %v2320_v32 = vmax.f32 %v2318_v8, %v2319_v16  ;;  %3225 = vmatmul.mubr.msk.f32.vlgmr.msra.gmra.mrb[14].mxu0 %vm316_vm6, %v3221_v15  ;;  %v1582_v26 = vsel %vm190_vm5, %v1580_v18, 0.0  ;;  %v1563_v33 = vsel %vm190_vm5, %v1561_v19, 0.0 }
 0xb6d   :  { %3363 = vmatpush3.bf16.msra.mxu0 %v3360_v57  ;;  %v1581_v1 = vsel %vm190_vm5, %v1579_v20, 0.0  ;;  %v1562_v27 = vsel %vm190_vm5, %v1560_v25, 0.0 }
 0xb6e   :  { %v2321_v28 = vsub.f32 %v2310_v55, %v2320_v32  ;;  %v2322_v29 = vsub.f32 %v2311_v50, %v2320_v32  ;;  %v1583_v44 = vadd.f32 %v1582_v26, %v1581_v1  ;;  %3241 = vmatprep.subr.mxu0 %v3962_v10  ;;  %v4104_v30 = vadd.f32 %v1563_v33, %v1562_v27 }
 0xb70   :  { %v2323_v31 = vmul.f32 1.442695, %v2321_v28  ;;  %v2325_v36 = vmul.f32 1.442695, %v2322_v29 }
 0xb72   :  { %3587 = vpow2.f32 %v2323_v31 }
 0xb73   :  { %3589 = vpow2.f32 %v2325_v36 }
 0xb7b   :  { %2531 = vrot.lane.b32.xlu0 %v3925_v24, %s3683_s10 }
 0xb7c   :  { %v3588_v45 = vpop.eup %3587 }
 0xb7d   :  { %v3590_v37 = vpop.eup %3589  ;;  %v2327_v38 = vsel %vm402_vm8, %v3588_v45, 0.0 }
 0xb7e   :  { %v2328_v39 = vsel %vm402_vm8, %v3590_v37, 0.0 }
 0xb7f   :  { %v2329_v40 = vadd.f32 %v2328_v39, %v2327_v38 }
 0xb81   :  { %v2330_v46 = vrot.slane %v2329_v40, 4 }
 0xb83   :  { %v2331_v23 = vadd.f32 %v2330_v46, %v2329_v40 }
 0xb85   :  { %v2332_v50 = vrot.slane %v2331_v23, 2 }
 0xb87   :  { %v2333_v51 = vadd.f32 %v2332_v50, %v2331_v23 }
 0xb89   :  { %v2334_v52 = vrot.slane %v2333_v51, 1 }
 0xb8b   :  { %v2335_v53 = vadd.f32 %v2334_v52, %v2333_v51 }
 0xb8d   :  { %3591 = vrcp.f32 %v2335_v53 }
 0xb97   :  { %v3592_v54 = vpop.eup %3591 }
 0xb98   :  { %v2338_v55 = vmul.f32 %v3592_v54, %v3590_v37  ;;  %v2337_v56 = vmul.f32 %v3592_v54, %v3588_v45 }
 0xb9a   :  { %v2342_v57 = vsel %vm402_vm8, %v2338_v55, -inf  ;;  %v2339_v24 = vsel %vm402_vm8, %v2337_v56, -inf }
 0xb9b   :  { %2343 = vmax.xlane.f32.xlu1 %v2342_v57  ;;  %2340 = vmax.xlane.f32.xlu0 %v2339_v24 }
 0xbac   :  { %3498 = vrot.lane.b32.xlu1 %v3929_v41, %s3685_s14 }
 0xbb0   :  { %3503 = vrot.lane.b32.xlu1 %v3929_v41, %s3686_s17 }
 0xbd4   :  { %1584 = vadd.xlane.f32.xlu1 %v1583_v44 }
 0xbee   :  { %v2041_v58 = vpop.xlane.xlu0 %2040 }
 0xbef   :  { %3593 = vrcp.f32 %v2041_v58 }
 0xbf2   :  { %v2044_v60 = vpop.xlane.xlu0 %2043 }
 0xbf3   :  { %3595 = vrcp.f32 %v2044_v60 }
 0xbf6   :  { %v2532_v49 = vpop.permute.xlu0 %2531 }
 0xbf7   :  { %3269 = vmatprep.mubr.msk.f32.mxu1 %vm316_vm6, %v2532_v49 }
 0xbf8   :  { %3270 = vmatmul.mubr.msk.f32.vlgmr.msra.gmra.mrb[20].mxu1 %vm316_vm6, %v4060_v48 }
 0xbf9   :  { %v3594_v61 = vpop.eup %3593 }
 0xbfa   :  { %v2046_v63 = vmul.f32 %v3594_v61, %v4068_v59 }
 0xbfc   :  { %3238 = vmatprep.mubr.msk.f32.mxu0 %vm402_vm8, %v2046_v63 }
 0xbfd   :  { %v3596_v0 = vpop.eup %3595 }
 0xbfe   :  { %v2048_v2 = vmul.f32 %v3596_v0, %v4072_v42 }
 0xc00   :  { %3239 = vmatmul.mubr.msk.f32.vlgmr.msra.gmra.mrb[16].mxu0 %vm402_vm8, %v2048_v2 }
 0xc01   :  { %3242 = vmatpush3.msra.mxu0 %v3962_v10 }
 0xc28   :  { %v2344_v41 = vpop.xlane.xlu1 %2343  ;;  %v2341_v43 = vpop.xlane.xlu0 %2340 }
 0xc29   :  { %v2346_v3 = vsub.f32 %v2338_v55, %v2344_v41  ;;  %v2345_v4 = vsub.f32 %v2337_v56, %v2341_v43 }
 0xc2b   :  { %v2347_v5 = vmul.f32 1.442695, %v2345_v4  ;;  %v2349_v8 = vmul.f32 1.442695, %v2346_v3 }
 0xc2c   :  { %v3499_v9 = vpop.permute.xlu1 %3498 }
 0xc2d   :  { %v3501_v48 = vunpack.i.h.bf16 %v3499_v9  ;;  %v3500_v13 = vunpack.i.l.bf16 %v3499_v9  ;;  %3597 = vpow2.f32 %v2347_v5 }
 0xc2e   :  { %3599 = vpow2.f32 %v2349_v8 }
 0xc2f   :  { %v3370_v59 = vpack.c.bf16 %v3501_v48, %v3500_v13 }
 0xc30   :  { %v3504_v29 = vpop.permute.xlu1 %3503 }
 0xc31   :  { %3371 = vmatprep.subr.bf16.mxu0 %v3370_v59  ;;  %v3506_v38 = vunpack.i.h.bf16 %v3504_v29  ;;  %v3505_v39 = vunpack.i.l.bf16 %v3504_v29 }
 0xc33   :  { %v3380_v50 = vpack.c.bf16 %v3506_v38, %v3505_v39 }
 0xc37   :  { %v3598_v15 = vpop.eup %3597 }
 0xc38   :  { %v2351_v42 = vsel %vm402_vm8, %v3598_v15, 0.0  ;;  %v3600_v16 = vpop.eup %3599 }
 0xc39   :  { %2352 = vadd.xlane.f32.xlu0 %v2351_v42  ;;  %v2354_v10 = vsel %vm402_vm8, %v3600_v16, 0.0 }
 0xc3d   :  { %2355 = vadd.xlane.f32.xlu0 %v2354_v10 }
 0xcc6   :  { %v2353_v17 = vpop.xlane.xlu0 %2352 }
 0xcc7   :  { %3601 = vrcp.f32 %v2353_v17 }
 0xcca   :  { %v2356_v18 = vpop.xlane.xlu0 %2355 }
 0xccb   :  { %3603 = vrcp.f32 %v2356_v18  ;;  %v3271_v19 = vpop.f32.mrb[20].mxu1 }
 0xccc   :  { %v2623_v20 = vmul.f32 0.17677669, %v3271_v19  ;;  %v2613_v25 = vpop.f32.mrb[21].mxu1 }
 0xccd   :  { %v2622_v32 = vmul.f32 0.17677669, %v2613_v25  ;;  %v1585_v25 = vpop.xlane.xlu1 %1584 }
 0xcce   :  { %v2625_v26 = vsel %vm402_vm8, %v2623_v20, -inf }
 0xccf   :  { %v2624_v33 = vsel %vm402_vm8, %v2622_v32, -inf }
 0xcd0   :  { %v2626_v1 = vmax.f32 %v2624_v33, %v2625_v26 }
 0xcd1   :  { %v3602_v27 = vpop.eup %3601 }
 0xcd2   :  { %v2627_v28 = vrot.slane %v2626_v1, 4  ;;  %v2358_v37 = vmul.f32 %v3602_v27, %v3598_v15 }
 0xcd3   :  { %v3240_v44 = vpop.f32.mrb[16].mxu0 }
 0xcd4   :  { %v2628_v31 = vmax.f32 %v2626_v1, %v2627_v28  ;;  %v2127_v36 = vpop.f32.mrb[17].mxu0 }
 0xcd5   :  { %v3604_v45 = vpop.eup %3603  ;;  %3243 = vmatprep.mubr.msk.f32.mxu0 %vm316_vm6, %v2127_v36 }
 0xcd6   :  { %v2629_v40 = vrot.slane %v2628_v31, 2  ;;  %3244 = vmatmul.mubr.msk.f32.vlgmr.msra.gmra.mrb[14].mxu0 %vm316_vm6, %v3240_v44  ;;  %v2360_v46 = vmul.f32 %v3604_v45, %v3600_v16 }
 0xcd7   :  { %3373 = vmatpush3.bf16.msra.mxu0 %v3370_v59  ;;  %3257 = vmatprep.mubr.msk.f32.mxu0 %vm402_vm8, %v2358_v37 }
 0xcd8   :  { %v2630_v23 = vmax.f32 %v2628_v31, %v2629_v40  ;;  %3260 = vmatprep.subr.mxu0 %v3991_v47 }
 0xcda   :  { %v2631_v51 = vrot.slane %v2630_v23, 1  ;;  %3258 = vmatmul.mubr.msk.f32.vlgmr.msra.gmra.mrb[18].mxu0 %vm402_vm8, %v2360_v46 }
 0xcdb   :  { %3261 = vmatpush3.msra.mxu0 %v3991_v47 }
 0xcdc   :  { %v2632_v52 = vmax.f32 %v2630_v23, %v2631_v51  ;;  %3381 = vmatprep.subr.bf16.mxu0 %v3380_v50 }
 0xcde   :  { %v2633_v53 = vsub.f32 %v2622_v32, %v2632_v52  ;;  %v2634_v54 = vsub.f32 %v2623_v20, %v2632_v52  ;;  %v1586_v32 = vrot.slane %v1585_v25, 4 }
 0xce0   :  { %v2635_v55 = vmul.f32 1.442695, %v2633_v53  ;;  %v2637_v56 = vmul.f32 1.442695, %v2634_v54  ;;  %v1587_v33 = vadd.f32 %v1586_v32, %v1585_v25 }
 0xce2   :  { %3605 = vpow2.f32 %v2635_v55  ;;  %v1588_v27 = vrot.slane %v1587_v33, 2 }
 0xce3   :  { %3607 = vpow2.f32 %v2637_v56 }
 0xce4   :  { %v1589_v36 = vadd.f32 %v1588_v27, %v1587_v33 }
 0xce6   :  { %v1590_v40 = vrot.slane %v1589_v36, 1 }
 0xcec   :  { %v3606_v57 = vpop.eup %3605 }
 0xced   :  { %v3608_v24 = vpop.eup %3607  ;;  %v2639_v58 = vsel %vm402_vm8, %v3606_v57, 0.0 }
 0xcee   :  { %v2640_v60 = vsel %vm402_vm8, %v3608_v24, 0.0 }
 0xcef   :  { %v2641_v49 = vadd.f32 %v2640_v60, %v2639_v58 }
 0xcf1   :  { %v2642_v61 = vrot.slane %v2641_v49, 4 }
 0xcf3   :  { %v2643_v63 = vadd.f32 %v2642_v61, %v2641_v49 }
 0xcf5   :  { %v2644_v0 = vrot.slane %v2643_v63, 2 }
 0xcf7   :  { %v2645_v2 = vadd.f32 %v2644_v0, %v2643_v63 }
 0xcf9   :  { %v2646_v47 = vrot.slane %v2645_v2, 1 }
 0xcfb   :  { %v2647_v41 = vadd.f32 %v2646_v47, %v2645_v2 }
 0xcfd   :  { %3609 = vrcp.f32 %v2647_v41 }
 0xd07   :  { %v3610_v43 = vpop.eup %3609 }
 0xd08   :  { %v2649_v3 = vmul.f32 %v3610_v43, %v3606_v57  ;;  %v2650_v4 = vmul.f32 %v3610_v43, %v3608_v24 }
 0xd0a   :  { %v2651_v5 = vsel %vm402_vm8, %v2649_v3, -inf  ;;  %v2654_v8 = vsel %vm402_vm8, %v2650_v4, -inf }
 0xd0b   :  { %2652 = vmax.xlane.f32.xlu0 %v2651_v5 }
 0xd0f   :  { %2655 = vmax.xlane.f32.xlu0 %v2654_v8 }
 0xd98   :  { %v2653_v9 = vpop.xlane.xlu0 %2652 }
 0xd99   :  { %v2657_v48 = vsub.f32 %v2649_v3, %v2653_v9 }
 0xd9b   :  { %v2659_v13 = vmul.f32 1.442695, %v2657_v48 }
 0xd9c   :  { %v2656_v59 = vpop.xlane.xlu0 %2655 }
 0xd9d   :  { %3611 = vpow2.f32 %v2659_v13  ;;  %v2658_v15 = vsub.f32 %v2650_v4, %v2656_v59  ;;  %v302_v13 = vshrl.u32 %v48_v21, 7  ;;  %v2989_v21 = vld [vmem:[%s4186_s7] ss:$0 sm:$0xff] }
 0xd9f   :  { %v2661_v42 = vmul.f32 1.442695, %v2658_v15  ;;  %vm1574_vm9 = vcmp.eq.s32.totalorder %v302_v13, 0  ;;  %vm2859_vm13 = vcmp.eq.s32.totalorder %v302_v13, 1 }
 0xda0   :  { %vm1576_vm11 = vmand %vm1574_vm9, %vm1575_vm10 }
 0xda1   :  { %3613 = vpow2.f32 %v2661_v42  ;;  %vm1594_vm14 = vmand %vm1574_vm9, %vm1593_vm12 }
 0xda2   :  { %vm2860_vm15 = vmand %vm2859_vm13, %vm1575_vm10 }
 0xda3   :  { %vm2877_vm0 = vmand %vm2859_vm13, %vm1593_vm12 }
 0xda7   :  { %v3612_v16 = vpop.eup %3611 }
 0xda8   :  { %v2663_v10 = vsel %vm402_vm8, %v3612_v16, 0.0 }
 0xda9   :  { %2664 = vadd.xlane.f32.xlu0 %v2663_v10 }
 0xdab   :  { %v3614_v17 = vpop.eup %3613 }
 0xdac   :  { %v2666_v18 = vsel %vm402_vm8, %v3614_v17, 0.0 }
 0xdad   :  { %2667 = vadd.xlane.f32.xlu0 %v2666_v18  ;;  %v3259_v19 = vpop.f32.mrb[18].mxu0 }
 0xdae   :  { %v2439_v20 = vpop.f32.mrb[19].mxu0 }
 0xdaf   :  { %3262 = vmatprep.mubr.msk.f32.mxu0 %vm316_vm6, %v2439_v20 }
 0xdb0   :  { %3263 = vmatmul.mubr.msk.f32.vlgmr.msra.gmra.mrb[14].mxu0 %vm316_vm6, %v3259_v19 }
 0xdb1   :  { %3383 = vmatpush3.bf16.msra.mxu0 %v3380_v50  ;;  %1565 = vadd.xlane.f32.xlu0 %v4104_v30  ;;  %v1591_v50 = vadd.f32 %v1590_v40, %v1589_v36 }
 0xdb2   :  { %3279 = vmatprep.subr.mxu0 %v4024_v14 }
 0xe36   :  { %v2665_v26 = vpop.xlane.xlu0 %2664 }
 0xe37   :  { %3615 = vrcp.f32 %v2665_v26 }
 0xe3a   :  { %v2668_v1 = vpop.xlane.xlu0 %2667 }
 0xe3b   :  { %3617 = vrcp.f32 %v2668_v1 }
 0xe3e   :  { %v1566_v28 = vpop.xlane.xlu0 %1565 }
 0xe3f   :  { %v1567_v29 = vrot.slane %v1566_v28, 4 }
 0xe41   :  { %v3616_v44 = vpop.eup %3615  ;;  %v1568_v31 = vadd.f32 %v1567_v29, %v1566_v28 }
 0xe42   :  { %v2670_v45 = vmul.f32 %v3616_v44, %v3612_v16 }
 0xe43   :  { %v1569_v37 = vrot.slane %v1568_v31, 2 }
 0xe44   :  { %3276 = vmatprep.mubr.msk.f32.mxu0 %vm402_vm8, %v2670_v45 }
 0xe45   :  { %v3618_v30 = vpop.eup %3617  ;;  %v1570_v38 = vadd.f32 %v1569_v37, %v1568_v31 }
 0xe46   :  { %v2672_v39 = vmul.f32 %v3618_v30, %v3614_v17 }
 0xe47   :  { %v1571_v46 = vrot.slane %v1570_v38, 1 }
 0xe48   :  { %3277 = vmatmul.mubr.msk.f32.vlgmr.msra.gmra.mrb[20].mxu0 %vm402_vm8, %v2672_v39 }
 0xe49   :  { %v1572_v23 = vadd.f32 %v1571_v46, %v1570_v38  ;;  %3280 = vmatpush3.msra.mxu0 %v4024_v14 }
 0xe4b   :  { %3400 = vpush %v1572_v23 }
 0xe4c   :  { %3402 = vpush %v1591_v50 }
 0xe7c   :  { %s3401_s5 = spop %3400 }
 0xe7d   :  { %v1577_v59 = vstv %s3401_s5  ;;  %s3403_s21 = spop %3402 }
 0xe7e   :  { %v1578_v15 = vsel %vm1576_vm11, %v1577_v59, 0.0  ;;  %v1595_v42 = vstv %s3403_s21 }
 0xe7f   :  { %v1596_v10 = vsel %vm1594_vm14, %v1595_v42, %v1578_v15 }
 0xf1b   :  { %v3278_v51 = vpop.f32.mrb[20].mxu0 }
 0xf1c   :  { %v2751_v52 = vpop.f32.mrb[21].mxu0 }
 0xf1d   :  { %3281 = vmatprep.mubr.msk.f32.mxu0 %vm316_vm6, %v2751_v52 }
 0xf1e   :  { %3282 = vmatmul.mubr.msk.f32.vlgmr.msra.gmra.mrb[14].mxu0 %vm316_vm6, %v3278_v51 }
 0xff1   :  { %v3283_v53 = vpop.f32.mrb[14].mxu0 }
 0xff2   :  { %v3386_v54 = vadd.f32 %v3283_v53, %v4077_v62  ;;  %v2832_v55 = vpop.f32.mrb[15].mxu0 }
 0xff3   :  { %v3387_v56 = vadd.f32 %v4077_v62, %v2832_v55 }
 0xff4   :  { %v2844_v57 = vadd.f32 %v3386_v54, %v3809_v34 }
 0xff5   :  { %v2843_v24 = vadd.f32 %v3387_v56, %v3811_v35 }
 0xff6   :  { %v2846_v14 = vmul.f32 %v2844_v57, %v4085_v7  ;;  %v2864_v58 = vmul.f32 %v2844_v57, %v4083_v6 }
 0xff7   :  { %v2845_v60 = vmul.f32 %v2843_v24, %v4090_v12  ;;  %v2863_v49 = vmul.f32 %v2843_v24, %v4088_v11 }
 0xff8   :  { %v2848_v61 = vsel %vm190_vm5, %v2846_v14, 0.0  ;;  %v2866_v63 = vsel %vm190_vm5, %v2864_v58, 0.0 }
 0xff9   :  { %v2847_v0 = vsel %vm190_vm5, %v2845_v60, 0.0  ;;  %v2865_v62 = vsel %vm190_vm5, %v2863_v49, 0.0 }
 0xffa   :  { %v2849_v2 = vadd.f32 %v2848_v61, %v2847_v0  ;;  %v2867_v34 = vadd.f32 %v2866_v63, %v2865_v62 }
 0xffc   :  { %2850 = vadd.xlane.f32.xlu0 %v2849_v2 }
0x1000   :  { %2868 = vadd.xlane.f32.xlu0 %v2867_v34 }
0x1089   :  { %v2851_v35 = vpop.xlane.xlu0 %2850 }
0x108a   :  { %v2852_v7 = vrot.slane %v2851_v35, 4 }
0x108c   :  { %v2853_v47 = vadd.f32 %v2852_v7, %v2851_v35 }
0x108d   :  { %v2869_v6 = vpop.xlane.xlu0 %2868 }
0x108e   :  { %v2854_v41 = vrot.slane %v2853_v47, 2  ;;  %v2870_v12 = vrot.slane %v2869_v6, 4 }
0x1090   :  { %v2871_v43 = vadd.f32 %v2870_v12, %v2869_v6  ;;  %v2855_v11 = vadd.f32 %v2854_v41, %v2853_v47 }
0x1092   :  { %v2872_v3 = vrot.slane %v2871_v43, 2  ;;  %v2856_v4 = vrot.slane %v2855_v11, 1 }
0x1094   :  { %v2873_v5 = vadd.f32 %v2872_v3, %v2871_v43  ;;  %v2857_v8 = vadd.f32 %v2856_v4, %v2855_v11 }
0x1096   :  { %3404 = vpush %v2857_v8  ;;  %v2874_v9 = vrot.slane %v2873_v5, 1 }
0x1098   :  { %v2875_v48 = vadd.f32 %v2874_v9, %v2873_v5 }
0x109a   :  { %3406 = vpush %v2875_v48 }
0x10c7   :  { %s3405_s22 = spop %3404 }
0x10c8   :  { %v2861_v16 = vstv %s3405_s22 }
0x10c9   :  { %v2862_v17 = vsel %vm2860_vm15, %v2861_v16, %v1596_v10 }
0x10cb   :  { %s3407_s23 = spop %3406 }
0x10cc   :  { %v2878_v18 = vstv %s3407_s23 }
0x10cd   :  { %v2879_v19 = vsel %vm2877_vm0, %v2878_v18, %v2862_v17 }
0x10ce   :  { %v2887_v20 = vadd.f32 %v2989_v21, %v2879_v19 }
0x10d0   :  { %v2990_v22 = vmul.f32 -1.442695, %v2887_v20 }
0x10d2   :  { %3619 = vpow2.f32 %v2990_v22 }
0x10dc   :  { %v3620_v25 = vpop.eup %3619 }
0x10dd   :  { %v2891_v32 = vadd.f32 1.0, %v3620_v25 }
0x10df   :  { %3621 = vrcp.f32 %v2891_v32 }
0x10e9   :  { %v3622_v26 = vpop.eup %3621 }
0x10ea   :  { %2895 = vst.msk [vmem:[#allocation5] sm:$0x3] %vm2894_vm1, %v3622_v26 }
0x10eb   :  { %3656 = shalt.err (!%p3653_p12)
}
0x10ec   :  { %s3657_s6 = scalar_lea.hbm %s4187_s8, 32 }
0x10ed   :  { %p3658_p13 = scmp.ne.s32.totalorder %s4187_s8, %s3657_s6  ;;  %p3661_p0 = scmp.lt.u32.totalorder %s3657_s6, %s4187_s8 }
0x10ef   :  { %p3663_p1 = pnand %p3661_p0, %p3658_p13 }
0x10f1   :  { %3666 = shalt.err (!%p3663_p1)
}
0x10f2   :  { %2905 = dma.vmem_to_hbm [thread:$0]  %s2903_s1, 32, %s4187_s8, [#allocation4]  }
0x10f3   :  { %3669 = dma.done.wait [#allocation4], 32  }
0x10f4   :  { %3670 = vsyncadd [#allocation4], 4294967264 }
0x10f5   :  { %2909 = vsyncpa [#allocation3], 1 }
0x10f6   :  { %2910 = vsyncpa [#allocation4], 1 }

</bundles_post_ra>
